<compile_context>
chip_gen: v7x
topology: tpu7x:2x2x1
jax: 0.10.0
libtpu: 0.0.40
codegen_flags: <defaults>
</compile_context>

<pallas_src>
import math
import functools

import jax
import jax.numpy as jnp
from jax.experimental import pallas as pl
from jax.experimental.pallas import tpu as pltpu

# ----------------------------- model config ---------------------------------
BATCH = 2
SEQ = 8
HIDDEN = 32
NUM_HEADS = 4
HEAD_DIM = HIDDEN // NUM_HEADS
INTERMEDIATE = 64
NUM_LAYERS = 2
LN_EPS = 1e-12  # XLM-Roberta / BERT layer_norm_eps

# MXU operand dtype: bf16 operands + f32 accumulation is the fast path on
# v6e/v7x (and still ~2x f32 on v5e).  Set to jnp.float32 for bit-level parity
# with the f32 PyTorch reference.  Elementwise math stays f32 regardless.
MXU_DTYPE = jnp.bfloat16


# ----------------------------- in-kernel helpers ------------------------------
def _gelu_tanh(x):
    # TODO(synk): HF XLMRoberta default hidden_act="gelu" is erf-based; tanh
    # approximation is used here for guaranteed Mosaic lowering (~1e-3 diff).
    c = math.sqrt(2.0 / math.pi)
    return 0.5 * x * (1.0 + jnp.tanh(c * (x + 0.044715 * x * x * x)))


def _layernorm(y, g, b):
    mean = jnp.mean(y, axis=-1, keepdims=True)
    c = y - mean
    var = jnp.mean(c * c, axis=-1, keepdims=True)
    return c * jax.lax.rsqrt(var + LN_EPS) * g + b


# ------------------------------ fused encoder kernel --------------------------
def _encoder_kernel(
    x_ref, mask_ref,
    wqkv_ref, bqkv_ref, wo_ref, bo_ref, ln1g_ref, ln1b_ref,
    wi_ref, bi_ref, wo2_ref, bo2_ref, ln2g_ref, ln2b_ref,
    hs_out_ref, probs_out_ref,
    hs_carry, ctx_buf,
    *, batch, seq, num_heads, head_dim, hidden,
):
    l = pl.program_id(0)

    # Layer 0: seed the VMEM-resident hidden-state carry from the input.
    @pl.when(l == 0)
    def _():
        hs_carry[...] = x_ref[...]

    x = hs_carry[...]                                      # [B*S, H] f32

    # ---- fused QKV projection: one MXU pass over the concatenated weight ----
    qkv = jnp.dot(x.astype(MXU_DTYPE), wqkv_ref[0],
                  preferred_element_type=jnp.float32) + bqkv_ref[0]   # [B*S, 3H]
    q = qkv[:, :hidden]
    k = qkv[:, hidden:2 * hidden]
    v = qkv[:, 2 * hidden:]

    mask = mask_ref[...]                                   # [B, 1, S] additive

    # ---- self-attention: all batches per head in batched einsums ------------
    for h in range(num_heads):
        sl = slice(h * head_dim, (h + 1) * head_dim)
        qh = q[:, sl].reshape(batch, seq, head_dim)
        kh = k[:, sl].reshape(batch, seq, head_dim)
        vh = v[:, sl].reshape(batch, seq, head_dim)
        # 1/sqrt(dH) already folded into the Q weights/bias at prep time.
        s = jnp.einsum("bqd,bkd->bqk",
                       qh.astype(MXU_DTYPE), kh.astype(MXU_DTYPE),
                       preferred_element_type=jnp.float32) + mask      # [B,S,S]
        smax = jnp.max(s, axis=-1, keepdims=True)
        e = jnp.exp(s - smax)
        p = e * pl.reciprocal(jnp.sum(e, axis=-1, keepdims=True), approx=True)
        # TODO(synk): probs last dim is S=8 (< 128 lanes) so stores are masked;
        # lane-dense packing only pays off at production sequence lengths.
        probs_out_ref[0, h] = p.reshape(batch * seq, seq)
        ctxh = jnp.einsum("bqk,bkd->bqd",
                          p.astype(MXU_DTYPE), vh.astype(MXU_DTYPE),
                          preferred_element_type=jnp.float32)
        ctx_buf[:, sl] = ctxh.reshape(batch * seq, head_dim)

    # ---- attention output projection + residual + LayerNorm 1 ---------------
    attn_out = jnp.dot(ctx_buf[...].astype(MXU_DTYPE), wo_ref[0],
                       preferred_element_type=jnp.float32) + bo_ref[0]
    hs1 = _layernorm(attn_out + x, ln1g_ref[0], ln1b_ref[0])

    # ---- feed-forward (GELU) + residual + LayerNorm 2 ------------------------
    inter = jnp.dot(hs1.astype(MXU_DTYPE), wi_ref[0],
                    preferred_element_type=jnp.float32) + bi_ref[0]
    inter = _gelu_tanh(inter)
    ffn_out = jnp.dot(inter.astype(MXU_DTYPE), wo2_ref[0],
                      preferred_element_type=jnp.float32) + bo2_ref[0]
    hs2 = _layernorm(ffn_out + hs1, ln2g_ref[0], ln2b_ref[0])

    hs_carry[...] = hs2          # carry to next layer (stays in VMEM)
    hs_out_ref[0] = hs2          # per-layer snapshot


# ------------------------------ parameter packing ------------------------------
def _stack_layer_params(layer_params):
    """Concatenate Q/K/V, fold 1/sqrt(dH) into Q, stack layers along a leading
    axis, cast matmul weights to MXU_DTYPE (biases / LN params stay f32)."""
    scale = 1.0 / math.sqrt(HEAD_DIM)

    def row(p):
        wqkv = jnp.concatenate([p["wq"] * scale, p["wk"], p["wv"]], axis=1)
        bqkv = jnp.concatenate([p["bq"] * scale, p["bk"], p["bv"]])[None, :]
        return dict(
            wqkv=wqkv.astype(MXU_DTYPE), bqkv=bqkv,
            wo=p["wo"].astype(MXU_DTYPE), bo=p["bo"][None, :],
            ln1g=p["ln1_g"][None, :], ln1b=p["ln1_b"][None, :],
            wi=p["wi"].astype(MXU_DTYPE), bi=p["bi"][None, :],
            wo2=p["wo2"].astype(MXU_DTYPE), bo2=p["bo2"][None, :],
            ln2g=p["ln2_g"][None, :], ln2b=p["ln2_b"][None, :],
        )

    rows = [row(p) for p in layer_params]
    keys = ["wqkv", "bqkv", "wo", "bo", "ln1g", "ln1b",
            "wi", "bi", "wo2", "bo2", "ln2g", "ln2b"]
    return [jnp.stack([r[k] for r in rows]) for k in keys]


# ------------------------------ encoder forward --------------------------------
def multimodal_encoder(hidden_states, ext_mask, layer_params,
                       output_all_encoded_layers=True):
    B, S, H = hidden_states.shape
    L = len(layer_params)
    BS = B * S
    nH, dH, I = NUM_HEADS, HEAD_DIM, INTERMEDIATE

    x2 = hidden_states.reshape(BS, H)
    mask3 = ext_mask.reshape(B, 1, S)                    # additive mask, 0 / -1e4
    stacked = _stack_layer_params(layer_params)

    kernel = functools.partial(_encoder_kernel, batch=B, seq=S,
                               num_heads=nH, head_dim=dH, hidden=H)

    def pspec(*tail):
        n = len(tail)
        return pl.BlockSpec((1,) + tail, lambda l, n=n: (l,) + (0,) * n)

    in_specs = [
        pl.BlockSpec((BS, H), lambda l: (0, 0)),          # x (read at layer 0)
        pl.BlockSpec((B, 1, S), lambda l: (0, 0, 0)),     # additive mask
        pspec(H, 3 * H), pspec(1, 3 * H),                 # wqkv, bqkv
        pspec(H, H), pspec(1, H),                         # wo, bo
        pspec(1, H), pspec(1, H),                         # ln1 gamma, beta
        pspec(H, I), pspec(1, I),                         # wi, bi
        pspec(I, H), pspec(1, H),                         # wo2, bo2
        pspec(1, H), pspec(1, H),                         # ln2 gamma, beta
    ]
    out_specs = [
        pl.BlockSpec((1, BS, H), lambda l: (l, 0, 0)),            # hidden states
        pl.BlockSpec((1, nH, BS, S), lambda l: (l, 0, 0, 0)),     # attn probs
    ]
    out_shape = (
        jax.ShapeDtypeStruct((L, BS, H), jnp.float32),
        jax.ShapeDtypeStruct((L, nH, BS, S), jnp.float32),
    )

    hs_all, probs_all = pl.pallas_call(
        kernel,
        out_shape=out_shape,
        grid_spec=pltpu.PrefetchScalarGridSpec(
            num_scalar_prefetch=0,
            grid=(L,),
            in_specs=in_specs,
            out_specs=out_specs,
            scratch_shapes=[
                pltpu.VMEM((BS, H), jnp.float32),   # hidden-state carry
                pltpu.VMEM((BS, H), jnp.float32),   # attention context buffer
            ],
        ),
        compiler_params=pltpu.CompilerParams(
            dimension_semantics=("arbitrary",)),    # sequential layer loop (carry)
    )(x2, mask3, *stacked)

    hs_layers = hs_all.reshape(L, B, S, H)
    probs = probs_all.reshape(L, nH, B, S, S).transpose(0, 2, 1, 3, 4)  # [L,B,nH,S,S]

    all_encoder_attentions = [probs[i] for i in range(L)]
    if output_all_encoded_layers:
        all_encoder_layers = [hs_layers[i] for i in range(L)]
    else:
        all_encoder_layers = [hs_layers[L - 1]]
    return all_encoder_layers, all_encoder_attentions


# ------------------------------ parameter init --------------------------------
def init_layer_params(key):
    ks = jax.random.split(key, 6)
    std = 0.02
    H, I = HIDDEN, INTERMEDIATE
    return dict(
        wq=jax.random.normal(ks[0], (H, H), jnp.float32) * std, bq=jnp.zeros(H, jnp.float32),
        wk=jax.random.normal(ks[1], (H, H), jnp.float32) * std, bk=jnp.zeros(H, jnp.float32),
        wv=jax.random.normal(ks[2], (H, H), jnp.float32) * std, bv=jnp.zeros(H, jnp.float32),
        wo=jax.random.normal(ks[3], (H, H), jnp.float32) * std, bo=jnp.zeros(H, jnp.float32),
        ln1_g=jnp.ones(H, jnp.float32), ln1_b=jnp.zeros(H, jnp.float32),
        wi=jax.random.normal(ks[4], (H, I), jnp.float32) * std, bi=jnp.zeros(I, jnp.float32),
        wo2=jax.random.normal(ks[5], (I, H), jnp.float32) * std, bo2=jnp.zeros(H, jnp.float32),
        ln2_g=jnp.ones(H, jnp.float32), ln2_b=jnp.zeros(H, jnp.float32),
    )


# ----------------------------------- main --------------------------------------
if __name__ == "__main__":
    key = jax.random.PRNGKey(0)
    k_hs, k_layers = jax.random.split(key)

    hidden_states = jax.random.normal(k_hs, (BATCH, SEQ, HIDDEN), jnp.float32)

    # token mask: batch 1 has its last 2 positions padded
    attn_mask = jnp.ones((BATCH, SEQ), jnp.float32)
    attn_mask = attn_mask.at[1, SEQ - 2:].set(0.0)
    ext_mask = (1.0 - attn_mask)[:, None, None, :] * -10000.0  # [B,1,1,S]

    layer_keys = jax.random.split(k_layers, NUM_LAYERS)
    layer_params = [init_layer_params(lk) for lk in layer_keys]

    fwd = jax.jit(
        lambda hs, m, params: multimodal_encoder(hs, m, params,
                                                 output_all_encoded_layers=True))
    all_layers, all_attentions = fwd(hidden_states, ext_mask, layer_params)

    last_hidden = jax.block_until_ready(all_layers[-1])
    last_attn = jax.block_until_ready(all_attentions[-1])

    assert len(all_layers) == NUM_LAYERS
    assert len(all_attentions) == NUM_LAYERS
    assert last_hidden.shape == (BATCH, SEQ, HIDDEN)
    assert last_attn.shape == (BATCH, NUM_HEADS, SEQ, SEQ)
    assert bool(jnp.all(jnp.isfinite(last_hidden)))
    # attention rows sum to ~1 (approx-reciprocal softmax denominator)
    assert bool(jnp.allclose(jnp.sum(last_attn, axis=-1), 1.0, atol=1e-2))

    print("KERNEL_OK")
</pallas_src>

<mosaic_0001>
module attributes {stable_mosaic.version = 11 : i64} {
  func.func @_encoder_kernel(%arg0: i32, %arg1: memref<16x32xf32, #tpu.memory_space<vmem>>, %arg2: memref<2x1x8xf32, #tpu.memory_space<vmem>>, %arg3: memref<1x32x96xbf16, #tpu.memory_space<vmem>>, %arg4: memref<1x1x96xf32, #tpu.memory_space<vmem>>, %arg5: memref<1x32x32xbf16, #tpu.memory_space<vmem>>, %arg6: memref<1x1x32xf32, #tpu.memory_space<vmem>>, %arg7: memref<1x1x32xf32, #tpu.memory_space<vmem>>, %arg8: memref<1x1x32xf32, #tpu.memory_space<vmem>>, %arg9: memref<1x32x64xbf16, #tpu.memory_space<vmem>>, %arg10: memref<1x1x64xf32, #tpu.memory_space<vmem>>, %arg11: memref<1x64x32xbf16, #tpu.memory_space<vmem>>, %arg12: memref<1x1x32xf32, #tpu.memory_space<vmem>>, %arg13: memref<1x1x32xf32, #tpu.memory_space<vmem>>, %arg14: memref<1x1x32xf32, #tpu.memory_space<vmem>>, %arg15: memref<1x16x32xf32, #tpu.memory_space<vmem>>, %arg16: memref<1x4x16x8xf32, #tpu.memory_space<vmem>>, %arg17: memref<16x32xf32, #tpu.memory_space<vmem>>, %arg18: memref<16x32xf32, #tpu.memory_space<vmem>>) attributes {dimension_semantics = [#tpu.dimension_semantics<arbitrary>], iteration_bounds = array<i64: 2>, scalar_prefetch = 0 : i64, scratch_operands = 2 : i64, tpu.core_type = #tpu.core_type<tc>, window_params = [{pipeline_mode = #tpu.pipeline_mode<synchronous>, transform_indices = @transform_0, window_bounds = array<i64: 16, 32>}, {pipeline_mode = #tpu.pipeline_mode<synchronous>, transform_indices = @transform_1, window_bounds = array<i64: 2, 1, 8>}, {transform_indices = @transform_2, window_bounds = array<i64: 1, 32, 96>}, {transform_indices = @transform_3, window_bounds = array<i64: 1, 1, 96>}, {transform_indices = @transform_4, window_bounds = array<i64: 1, 32, 32>}, {transform_indices = @transform_5, window_bounds = array<i64: 1, 1, 32>}, {transform_indices = @transform_6, window_bounds = array<i64: 1, 1, 32>}, {transform_indices = @transform_7, window_bounds = array<i64: 1, 1, 32>}, {transform_indices = @transform_8, window_bounds = array<i64: 1, 32, 64>}, {transform_indices = @transform_9, window_bounds = array<i64: 1, 1, 64>}, {transform_indices = @transform_10, window_bounds = array<i64: 1, 64, 32>}, {transform_indices = @transform_11, window_bounds = array<i64: 1, 1, 32>}, {transform_indices = @transform_12, window_bounds = array<i64: 1, 1, 32>}, {transform_indices = @transform_13, window_bounds = array<i64: 1, 1, 32>}, {transform_indices = @transform_14, window_bounds = array<i64: 1, 16, 32>}, {transform_indices = @transform_15, window_bounds = array<i64: 1, 4, 16, 8>}]} {
    %c0_i32 = arith.constant 0 : i32
    %0 = arith.cmpi eq, %arg0, %c0_i32 : i32
    %1 = arith.extui %0 : i1 to i32
    %c0_i32_0 = arith.constant 0 : i32
    %2 = arith.cmpi ne, %1, %c0_i32_0 : i32
    scf.if %2 {
      %c0_99 = arith.constant 0 : index
      %c0_100 = arith.constant 0 : index
      %228 = vector.load %arg1[%c0_99, %c0_100] : memref<16x32xf32, #tpu.memory_space<vmem>>, vector<16x32xf32>
      %c0_101 = arith.constant 0 : index
      %c0_102 = arith.constant 0 : index
      %229 = vector.load %arg17[%c0_101, %c0_102] : memref<16x32xf32, #tpu.memory_space<vmem>>, vector<16x32xf32>
      tpu.vector_store %arg17[%c0_101, %c0_102], %228 {strides = array<i32>} : memref<16x32xf32, #tpu.memory_space<vmem>>, vector<16x32xf32>,
    } else {
    }
    %c0 = arith.constant 0 : index
    %c0_1 = arith.constant 0 : index
    %3 = vector.load %arg17[%c0, %c0_1] : memref<16x32xf32, #tpu.memory_space<vmem>>, vector<16x32xf32>
    %4 = arith.truncf %3 : vector<16x32xf32> to vector<16x32xbf16>
    %c0_2 = arith.constant 0 : index
    %c0_3 = arith.constant 0 : index
    %c0_4 = arith.constant 0 : index
    %5 = vector.load %arg3[%c0_2, %c0_3, %c0_4] : memref<1x32x96xbf16, #tpu.memory_space<vmem>>, vector<1x32x96xbf16>
    %6 = vector.shape_cast %5 : vector<1x32x96xbf16> to vector<32x96xbf16>
    %cst = arith.constant dense<0.000000e+00> : vector<16x96xf32>
    %7 = tpu.matmul %4, %6, %cst {dimension_numbers = #tpu.dot_dimension_numbers<[1], [0], [0], [1], [0, 0, 1, 1], [], []>} : vector<16x32xbf16>, vector<32x96xbf16>, vector<16x96xf32> -> vector<16x96xf32>
    %c0_5 = arith.constant 0 : index
    %c0_6 = arith.constant 0 : index
    %c0_7 = arith.constant 0 : index
    %8 = vector.load %arg4[%c0_5, %c0_6, %c0_7] : memref<1x1x96xf32, #tpu.memory_space<vmem>>, vector<1x1x96xf32>
    %9 = vector.shape_cast %8 : vector<1x1x96xf32> to vector<1x96xf32>
    %10 = vector.broadcast %9 : vector<1x96xf32> to vector<16x96xf32>
    %11 = arith.addf %7, %10 : vector<16x96xf32>
    %12 = vector.extract_strided_slice %11 {offsets = [0, 0], sizes = [16, 32], strides = [1, 1]} : vector<16x96xf32> to vector<16x32xf32>
    %13 = vector.extract_strided_slice %11 {offsets = [0, 32], sizes = [16, 32], strides = [1, 1]} : vector<16x96xf32> to vector<16x32xf32>
    %14 = vector.extract_strided_slice %11 {offsets = [0, 64], sizes = [16, 32], strides = [1, 1]} : vector<16x96xf32> to vector<16x32xf32>
    %c0_8 = arith.constant 0 : index
    %c0_9 = arith.constant 0 : index
    %c0_10 = arith.constant 0 : index
    %15 = vector.load %arg2[%c0_8, %c0_9, %c0_10] : memref<2x1x8xf32, #tpu.memory_space<vmem>>, vector<2x1x8xf32>
    %16 = vector.extract_strided_slice %12 {offsets = [0, 0], sizes = [16, 8], strides = [1, 1]} : vector<16x32xf32> to vector<16x8xf32>
    %17 = vector.shape_cast %16 : vector<16x8xf32> to vector<2x8x8xf32>
    %18 = vector.extract_strided_slice %13 {offsets = [0, 0], sizes = [16, 8], strides = [1, 1]} : vector<16x32xf32> to vector<16x8xf32>
    %19 = vector.shape_cast %18 : vector<16x8xf32> to vector<2x8x8xf32>
    %20 = vector.extract_strided_slice %14 {offsets = [0, 0], sizes = [16, 8], strides = [1, 1]} : vector<16x32xf32> to vector<16x8xf32>
    %21 = vector.shape_cast %20 : vector<16x8xf32> to vector<2x8x8xf32>
    %22 = arith.truncf %17 : vector<2x8x8xf32> to vector<2x8x8xbf16>
    %23 = arith.truncf %19 : vector<2x8x8xf32> to vector<2x8x8xbf16>
    "tpu.trace_start"() <{level = 10 : i32, message = "bqd,bkd->bqk"}> : () -> ()
    %cst_11 = arith.constant dense<0.000000e+00> : vector<2x8x8xf32>
    %24 = tpu.matmul %22, %23, %cst_11 {dimension_numbers = #tpu.dot_dimension_numbers<[2], [2], [1], [1], [0, 0, 0, 1, 1, 1], [0], [0]>} : vector<2x8x8xbf16>, vector<2x8x8xbf16>, vector<2x8x8xf32> -> vector<2x8x8xf32>
    "tpu.trace_stop"() : () -> ()
    %25 = vector.broadcast %15 : vector<2x1x8xf32> to vector<2x8x8xf32>
    %26 = arith.addf %24, %25 : vector<2x8x8xf32>
    %cst_12 = arith.constant dense<0xFF800000> : vector<2x8xf32>
    %27 = vector.multi_reduction <maximumf>, %26, %cst_12 [2] : vector<2x8x8xf32> to vector<2x8xf32>
    %28 = vector.shape_cast %27 : vector<2x8xf32> to vector<2x8x1xf32>
    %29 = vector.broadcast %28 : vector<2x8x1xf32> to vector<2x8x8xf32>
    %30 = arith.subf %26, %29 : vector<2x8x8xf32>
    %31 = math.exp %30 : vector<2x8x8xf32>
    %cst_13 = arith.constant dense<0.000000e+00> : vector<2x8xf32>
    %32 = vector.multi_reduction <add>, %31, %cst_13 [2] : vector<2x8x8xf32> to vector<2x8xf32>
    %33 = vector.shape_cast %32 : vector<2x8xf32> to vector<2x8x1xf32>
    %34 = tpu.reciprocal %33 {approx = true} : vector<2x8x1xf32> -> vector<2x8x1xf32>
    %35 = vector.broadcast %34 : vector<2x8x1xf32> to vector<2x8x8xf32>
    %36 = arith.mulf %31, %35 : vector<2x8x8xf32>
    %37 = vector.shape_cast %36 : vector<2x8x8xf32> to vector<16x8xf32>
    %c0_14 = arith.constant 0 : index
    %c0_15 = arith.constant 0 : index
    %c0_16 = arith.constant 0 : index
    %c0_17 = arith.constant 0 : index
    %38 = vector.load %arg16[%c0_14, %c0_15, %c0_16, %c0_17] : memref<1x4x16x8xf32, #tpu.memory_space<vmem>>, vector<1x1x16x8xf32>
    %39 = vector.shape_cast %38 : vector<1x1x16x8xf32> to vector<16x8xf32>
    %40 = vector.shape_cast %37 : vector<16x8xf32> to vector<1x1x16x8xf32>
    tpu.vector_store %arg16[%c0_14, %c0_15, %c0_16, %c0_17], %40 {strides = array<i32>} : memref<1x4x16x8xf32, #tpu.memory_space<vmem>>, vector<1x1x16x8xf32>,
    %41 = arith.truncf %36 : vector<2x8x8xf32> to vector<2x8x8xbf16>
    %42 = arith.truncf %21 : vector<2x8x8xf32> to vector<2x8x8xbf16>
    "tpu.trace_start"() <{level = 10 : i32, message = "bqk,bkd->bqd"}> : () -> ()
    %cst_18 = arith.constant dense<0.000000e+00> : vector<2x8x8xf32>
    %43 = tpu.matmul %41, %42, %cst_18 {dimension_numbers = #tpu.dot_dimension_numbers<[2], [1], [1], [2], [0, 0, 0, 1, 1, 2], [0], [0]>} : vector<2x8x8xbf16>, vector<2x8x8xbf16>, vector<2x8x8xf32> -> vector<2x8x8xf32>
    "tpu.trace_stop"() : () -> ()
    %44 = vector.shape_cast %43 : vector<2x8x8xf32> to vector<16x8xf32>
    %c0_19 = arith.constant 0 : index
    %c0_20 = arith.constant 0 : index
    %45 = vector.load %arg18[%c0_19, %c0_20] : memref<16x32xf32, #tpu.memory_space<vmem>>, vector<16x8xf32>
    tpu.vector_store %arg18[%c0_19, %c0_20], %44 {strides = array<i32>} : memref<16x32xf32, #tpu.memory_space<vmem>>, vector<16x8xf32>,
    %46 = vector.extract_strided_slice %12 {offsets = [0, 8], sizes = [16, 8], strides = [1, 1]} : vector<16x32xf32> to vector<16x8xf32>
    %47 = vector.shape_cast %46 : vector<16x8xf32> to vector<2x8x8xf32>
    %48 = vector.extract_strided_slice %13 {offsets = [0, 8], sizes = [16, 8], strides = [1, 1]} : vector<16x32xf32> to vector<16x8xf32>
    %49 = vector.shape_cast %48 : vector<16x8xf32> to vector<2x8x8xf32>
    %50 = vector.extract_strided_slice %14 {offsets = [0, 8], sizes = [16, 8], strides = [1, 1]} : vector<16x32xf32> to vector<16x8xf32>
    %51 = vector.shape_cast %50 : vector<16x8xf32> to vector<2x8x8xf32>
    %52 = arith.truncf %47 : vector<2x8x8xf32> to vector<2x8x8xbf16>
    %53 = arith.truncf %49 : vector<2x8x8xf32> to vector<2x8x8xbf16>
    "tpu.trace_start"() <{level = 10 : i32, message = "bqd,bkd->bqk"}> : () -> ()
    %cst_21 = arith.constant dense<0.000000e+00> : vector<2x8x8xf32>
    %54 = tpu.matmul %52, %53, %cst_21 {dimension_numbers = #tpu.dot_dimension_numbers<[2], [2], [1], [1], [0, 0, 0, 1, 1, 1], [0], [0]>} : vector<2x8x8xbf16>, vector<2x8x8xbf16>, vector<2x8x8xf32> -> vector<2x8x8xf32>
    "tpu.trace_stop"() : () -> ()
    %55 = vector.broadcast %15 : vector<2x1x8xf32> to vector<2x8x8xf32>
    %56 = arith.addf %54, %55 : vector<2x8x8xf32>
    %cst_22 = arith.constant dense<0xFF800000> : vector<2x8xf32>
    %57 = vector.multi_reduction <maximumf>, %56, %cst_22 [2] : vector<2x8x8xf32> to vector<2x8xf32>
    %58 = vector.shape_cast %57 : vector<2x8xf32> to vector<2x8x1xf32>
    %59 = vector.broadcast %58 : vector<2x8x1xf32> to vector<2x8x8xf32>
    %60 = arith.subf %56, %59 : vector<2x8x8xf32>
    %61 = math.exp %60 : vector<2x8x8xf32>
    %cst_23 = arith.constant dense<0.000000e+00> : vector<2x8xf32>
    %62 = vector.multi_reduction <add>, %61, %cst_23 [2] : vector<2x8x8xf32> to vector<2x8xf32>
    %63 = vector.shape_cast %62 : vector<2x8xf32> to vector<2x8x1xf32>
    %64 = tpu.reciprocal %63 {approx = true} : vector<2x8x1xf32> -> vector<2x8x1xf32>
    %65 = vector.broadcast %64 : vector<2x8x1xf32> to vector<2x8x8xf32>
    %66 = arith.mulf %61, %65 : vector<2x8x8xf32>
    %67 = vector.shape_cast %66 : vector<2x8x8xf32> to vector<16x8xf32>
    %c0_24 = arith.constant 0 : index
    %c1 = arith.constant 1 : index
    %c0_25 = arith.constant 0 : index
    %c0_26 = arith.constant 0 : index
    %68 = vector.load %arg16[%c0_24, %c1, %c0_25, %c0_26] : memref<1x4x16x8xf32, #tpu.memory_space<vmem>>, vector<1x1x16x8xf32>
    %69 = vector.shape_cast %68 : vector<1x1x16x8xf32> to vector<16x8xf32>
    %70 = vector.shape_cast %67 : vector<16x8xf32> to vector<1x1x16x8xf32>
    tpu.vector_store %arg16[%c0_24, %c1, %c0_25, %c0_26], %70 {strides = array<i32>} : memref<1x4x16x8xf32, #tpu.memory_space<vmem>>, vector<1x1x16x8xf32>,
    %71 = arith.truncf %66 : vector<2x8x8xf32> to vector<2x8x8xbf16>
    %72 = arith.truncf %51 : vector<2x8x8xf32> to vector<2x8x8xbf16>
    "tpu.trace_start"() <{level = 10 : i32, message = "bqk,bkd->bqd"}> : () -> ()
    %cst_27 = arith.constant dense<0.000000e+00> : vector<2x8x8xf32>
    %73 = tpu.matmul %71, %72, %cst_27 {dimension_numbers = #tpu.dot_dimension_numbers<[2], [1], [1], [2], [0, 0, 0, 1, 1, 2], [0], [0]>} : vector<2x8x8xbf16>, vector<2x8x8xbf16>, vector<2x8x8xf32> -> vector<2x8x8xf32>
    "tpu.trace_stop"() : () -> ()
    %74 = vector.shape_cast %73 : vector<2x8x8xf32> to vector<16x8xf32>
    %c0_28 = arith.constant 0 : index
    %c8 = arith.constant 8 : index
    %75 = vector.load %arg18[%c0_28, %c8] : memref<16x32xf32, #tpu.memory_space<vmem>>, vector<16x8xf32>
    tpu.vector_store %arg18[%c0_28, %c8], %74 {strides = array<i32>} : memref<16x32xf32, #tpu.memory_space<vmem>>, vector<16x8xf32>,
    %76 = vector.extract_strided_slice %12 {offsets = [0, 16], sizes = [16, 8], strides = [1, 1]} : vector<16x32xf32> to vector<16x8xf32>
    %77 = vector.shape_cast %76 : vector<16x8xf32> to vector<2x8x8xf32>
    %78 = vector.extract_strided_slice %13 {offsets = [0, 16], sizes = [16, 8], strides = [1, 1]} : vector<16x32xf32> to vector<16x8xf32>
    %79 = vector.shape_cast %78 : vector<16x8xf32> to vector<2x8x8xf32>
    %80 = vector.extract_strided_slice %14 {offsets = [0, 16], sizes = [16, 8], strides = [1, 1]} : vector<16x32xf32> to vector<16x8xf32>
    %81 = vector.shape_cast %80 : vector<16x8xf32> to vector<2x8x8xf32>
    %82 = arith.truncf %77 : vector<2x8x8xf32> to vector<2x8x8xbf16>
    %83 = arith.truncf %79 : vector<2x8x8xf32> to vector<2x8x8xbf16>
    "tpu.trace_start"() <{level = 10 : i32, message = "bqd,bkd->bqk"}> : () -> ()
    %cst_29 = arith.constant dense<0.000000e+00> : vector<2x8x8xf32>
    %84 = tpu.matmul %82, %83, %cst_29 {dimension_numbers = #tpu.dot_dimension_numbers<[2], [2], [1], [1], [0, 0, 0, 1, 1, 1], [0], [0]>} : vector<2x8x8xbf16>, vector<2x8x8xbf16>, vector<2x8x8xf32> -> vector<2x8x8xf32>
    "tpu.trace_stop"() : () -> ()
    %85 = vector.broadcast %15 : vector<2x1x8xf32> to vector<2x8x8xf32>
    %86 = arith.addf %84, %85 : vector<2x8x8xf32>
    %cst_30 = arith.constant dense<0xFF800000> : vector<2x8xf32>
    %87 = vector.multi_reduction <maximumf>, %86, %cst_30 [2] : vector<2x8x8xf32> to vector<2x8xf32>
    %88 = vector.shape_cast %87 : vector<2x8xf32> to vector<2x8x1xf32>
    %89 = vector.broadcast %88 : vector<2x8x1xf32> to vector<2x8x8xf32>
    %90 = arith.subf %86, %89 : vector<2x8x8xf32>
    %91 = math.exp %90 : vector<2x8x8xf32>
    %cst_31 = arith.constant dense<0.000000e+00> : vector<2x8xf32>
    %92 = vector.multi_reduction <add>, %91, %cst_31 [2] : vector<2x8x8xf32> to vector<2x8xf32>
    %93 = vector.shape_cast %92 : vector<2x8xf32> to vector<2x8x1xf32>
    %94 = tpu.reciprocal %93 {approx = true} : vector<2x8x1xf32> -> vector<2x8x1xf32>
    %95 = vector.broadcast %94 : vector<2x8x1xf32> to vector<2x8x8xf32>
    %96 = arith.mulf %91, %95 : vector<2x8x8xf32>
    %97 = vector.shape_cast %96 : vector<2x8x8xf32> to vector<16x8xf32>
    %c0_32 = arith.constant 0 : index
    %c2 = arith.constant 2 : index
    %c0_33 = arith.constant 0 : index
    %c0_34 = arith.constant 0 : index
    %98 = vector.load %arg16[%c0_32, %c2, %c0_33, %c0_34] : memref<1x4x16x8xf32, #tpu.memory_space<vmem>>, vector<1x1x16x8xf32>
    %99 = vector.shape_cast %98 : vector<1x1x16x8xf32> to vector<16x8xf32>
    %100 = vector.shape_cast %97 : vector<16x8xf32> to vector<1x1x16x8xf32>
    tpu.vector_store %arg16[%c0_32, %c2, %c0_33, %c0_34], %100 {strides = array<i32>} : memref<1x4x16x8xf32, #tpu.memory_space<vmem>>, vector<1x1x16x8xf32>,
    %101 = arith.truncf %96 : vector<2x8x8xf32> to vector<2x8x8xbf16>
    %102 = arith.truncf %81 : vector<2x8x8xf32> to vector<2x8x8xbf16>
    "tpu.trace_start"() <{level = 10 : i32, message = "bqk,bkd->bqd"}> : () -> ()
    %cst_35 = arith.constant dense<0.000000e+00> : vector<2x8x8xf32>
    %103 = tpu.matmul %101, %102, %cst_35 {dimension_numbers = #tpu.dot_dimension_numbers<[2], [1], [1], [2], [0, 0, 0, 1, 1, 2], [0], [0]>} : vector<2x8x8xbf16>, vector<2x8x8xbf16>, vector<2x8x8xf32> -> vector<2x8x8xf32>
    "tpu.trace_stop"() : () -> ()
    %104 = vector.shape_cast %103 : vector<2x8x8xf32> to vector<16x8xf32>
    %c0_36 = arith.constant 0 : index
    %c16 = arith.constant 16 : index
    %105 = vector.load %arg18[%c0_36, %c16] : memref<16x32xf32, #tpu.memory_space<vmem>>, vector<16x8xf32>
    tpu.vector_store %arg18[%c0_36, %c16], %104 {strides = array<i32>} : memref<16x32xf32, #tpu.memory_space<vmem>>, vector<16x8xf32>,
    %106 = vector.extract_strided_slice %12 {offsets = [0, 24], sizes = [16, 8], strides = [1, 1]} : vector<16x32xf32> to vector<16x8xf32>
    %107 = vector.shape_cast %106 : vector<16x8xf32> to vector<2x8x8xf32>
    %108 = vector.extract_strided_slice %13 {offsets = [0, 24], sizes = [16, 8], strides = [1, 1]} : vector<16x32xf32> to vector<16x8xf32>
    %109 = vector.shape_cast %108 : vector<16x8xf32> to vector<2x8x8xf32>
    %110 = vector.extract_strided_slice %14 {offsets = [0, 24], sizes = [16, 8], strides = [1, 1]} : vector<16x32xf32> to vector<16x8xf32>
    %111 = vector.shape_cast %110 : vector<16x8xf32> to vector<2x8x8xf32>
    %112 = arith.truncf %107 : vector<2x8x8xf32> to vector<2x8x8xbf16>
    %113 = arith.truncf %109 : vector<2x8x8xf32> to vector<2x8x8xbf16>
    "tpu.trace_start"() <{level = 10 : i32, message = "bqd,bkd->bqk"}> : () -> ()
    %cst_37 = arith.constant dense<0.000000e+00> : vector<2x8x8xf32>
    %114 = tpu.matmul %112, %113, %cst_37 {dimension_numbers = #tpu.dot_dimension_numbers<[2], [2], [1], [1], [0, 0, 0, 1, 1, 1], [0], [0]>} : vector<2x8x8xbf16>, vector<2x8x8xbf16>, vector<2x8x8xf32> -> vector<2x8x8xf32>
    "tpu.trace_stop"() : () -> ()
    %115 = vector.broadcast %15 : vector<2x1x8xf32> to vector<2x8x8xf32>
    %116 = arith.addf %114, %115 : vector<2x8x8xf32>
    %cst_38 = arith.constant dense<0xFF800000> : vector<2x8xf32>
    %117 = vector.multi_reduction <maximumf>, %116, %cst_38 [2] : vector<2x8x8xf32> to vector<2x8xf32>
    %118 = vector.shape_cast %117 : vector<2x8xf32> to vector<2x8x1xf32>
    %119 = vector.broadcast %118 : vector<2x8x1xf32> to vector<2x8x8xf32>
    %120 = arith.subf %116, %119 : vector<2x8x8xf32>
    %121 = math.exp %120 : vector<2x8x8xf32>
    %cst_39 = arith.constant dense<0.000000e+00> : vector<2x8xf32>
    %122 = vector.multi_reduction <add>, %121, %cst_39 [2] : vector<2x8x8xf32> to vector<2x8xf32>
    %123 = vector.shape_cast %122 : vector<2x8xf32> to vector<2x8x1xf32>
    %124 = tpu.reciprocal %123 {approx = true} : vector<2x8x1xf32> -> vector<2x8x1xf32>
    %125 = vector.broadcast %124 : vector<2x8x1xf32> to vector<2x8x8xf32>
    %126 = arith.mulf %121, %125 : vector<2x8x8xf32>
    %127 = vector.shape_cast %126 : vector<2x8x8xf32> to vector<16x8xf32>
    %c0_40 = arith.constant 0 : index
    %c3 = arith.constant 3 : index
    %c0_41 = arith.constant 0 : index
    %c0_42 = arith.constant 0 : index
    %128 = vector.load %arg16[%c0_40, %c3, %c0_41, %c0_42] : memref<1x4x16x8xf32, #tpu.memory_space<vmem>>, vector<1x1x16x8xf32>
    %129 = vector.shape_cast %128 : vector<1x1x16x8xf32> to vector<16x8xf32>
    %130 = vector.shape_cast %127 : vector<16x8xf32> to vector<1x1x16x8xf32>
    tpu.vector_store %arg16[%c0_40, %c3, %c0_41, %c0_42], %130 {strides = array<i32>} : memref<1x4x16x8xf32, #tpu.memory_space<vmem>>, vector<1x1x16x8xf32>,
    %131 = arith.truncf %126 : vector<2x8x8xf32> to vector<2x8x8xbf16>
    %132 = arith.truncf %111 : vector<2x8x8xf32> to vector<2x8x8xbf16>
    "tpu.trace_start"() <{level = 10 : i32, message = "bqk,bkd->bqd"}> : () -> ()
    %cst_43 = arith.constant dense<0.000000e+00> : vector<2x8x8xf32>
    %133 = tpu.matmul %131, %132, %cst_43 {dimension_numbers = #tpu.dot_dimension_numbers<[2], [1], [1], [2], [0, 0, 0, 1, 1, 2], [0], [0]>} : vector<2x8x8xbf16>, vector<2x8x8xbf16>, vector<2x8x8xf32> -> vector<2x8x8xf32>
    "tpu.trace_stop"() : () -> ()
    %134 = vector.shape_cast %133 : vector<2x8x8xf32> to vector<16x8xf32>
    %c0_44 = arith.constant 0 : index
    %c24 = arith.constant 24 : index
    %135 = vector.load %arg18[%c0_44, %c24] : memref<16x32xf32, #tpu.memory_space<vmem>>, vector<16x8xf32>
    tpu.vector_store %arg18[%c0_44, %c24], %134 {strides = array<i32>} : memref<16x32xf32, #tpu.memory_space<vmem>>, vector<16x8xf32>,
    %c0_45 = arith.constant 0 : index
    %c0_46 = arith.constant 0 : index
    %136 = vector.load %arg18[%c0_45, %c0_46] : memref<16x32xf32, #tpu.memory_space<vmem>>, vector<16x32xf32>
    %137 = arith.truncf %136 : vector<16x32xf32> to vector<16x32xbf16>
    %c0_47 = arith.constant 0 : index
    %c0_48 = arith.constant 0 : index
    %c0_49 = arith.constant 0 : index
    %138 = vector.load %arg5[%c0_47, %c0_48, %c0_49] : memref<1x32x32xbf16, #tpu.memory_space<vmem>>, vector<1x32x32xbf16>
    %139 = vector.shape_cast %138 : vector<1x32x32xbf16> to vector<32x32xbf16>
    %cst_50 = arith.constant dense<0.000000e+00> : vector<16x32xf32>
    %140 = tpu.matmul %137, %139, %cst_50 {dimension_numbers = #tpu.dot_dimension_numbers<[1], [0], [0], [1], [0, 0, 1, 1], [], []>} : vector<16x32xbf16>, vector<32x32xbf16>, vector<16x32xf32> -> vector<16x32xf32>
    %c0_51 = arith.constant 0 : index
    %c0_52 = arith.constant 0 : index
    %c0_53 = arith.constant 0 : index
    %141 = vector.load %arg6[%c0_51, %c0_52, %c0_53] : memref<1x1x32xf32, #tpu.memory_space<vmem>>, vector<1x1x32xf32>
    %142 = vector.shape_cast %141 : vector<1x1x32xf32> to vector<1x32xf32>
    %143 = vector.broadcast %142 : vector<1x32xf32> to vector<16x32xf32>
    %144 = arith.addf %140, %143 : vector<16x32xf32>
    %145 = arith.addf %144, %3 : vector<16x32xf32>
    %c0_54 = arith.constant 0 : index
    %c0_55 = arith.constant 0 : index
    %c0_56 = arith.constant 0 : index
    %146 = vector.load %arg7[%c0_54, %c0_55, %c0_56] : memref<1x1x32xf32, #tpu.memory_space<vmem>>, vector<1x1x32xf32>
    %147 = vector.shape_cast %146 : vector<1x1x32xf32> to vector<1x32xf32>
    %c0_57 = arith.constant 0 : index
    %c0_58 = arith.constant 0 : index
    %c0_59 = arith.constant 0 : index
    %148 = vector.load %arg8[%c0_57, %c0_58, %c0_59] : memref<1x1x32xf32, #tpu.memory_space<vmem>>, vector<1x1x32xf32>
    %149 = vector.shape_cast %148 : vector<1x1x32xf32> to vector<1x32xf32>
    %cst_60 = arith.constant dense<0.000000e+00> : vector<16xf32>
    %150 = vector.multi_reduction <add>, %145, %cst_60 [1] : vector<16x32xf32> to vector<16xf32>
    %151 = vector.shape_cast %150 : vector<16xf32> to vector<16x1xf32>
    %cst_61 = arith.constant 3.200000e+01 : f32
    %152 = vector.broadcast %cst_61 : f32 to vector<16x1xf32>
    %153 = arith.divf %151, %152 : vector<16x1xf32>
    %154 = vector.broadcast %153 : vector<16x1xf32> to vector<16x32xf32>
    %155 = arith.subf %145, %154 : vector<16x32xf32>
    %156 = arith.mulf %155, %155 : vector<16x32xf32>
    %cst_62 = arith.constant dense<0.000000e+00> : vector<16xf32>
    %157 = vector.multi_reduction <add>, %156, %cst_62 [1] : vector<16x32xf32> to vector<16xf32>
    %158 = vector.shape_cast %157 : vector<16xf32> to vector<16x1xf32>
    %cst_63 = arith.constant 3.200000e+01 : f32
    %159 = vector.broadcast %cst_63 : f32 to vector<16x1xf32>
    %160 = arith.divf %158, %159 : vector<16x1xf32>
    %cst_64 = arith.constant 9.99999996E-13 : f32
    %161 = vector.broadcast %cst_64 : f32 to vector<16x1xf32>
    %162 = arith.addf %160, %161 : vector<16x1xf32>
    %163 = math.rsqrt %162 : vector<16x1xf32>
    %164 = vector.broadcast %163 : vector<16x1xf32> to vector<16x32xf32>
    %165 = arith.mulf %155, %164 : vector<16x32xf32>
    %166 = vector.broadcast %147 : vector<1x32xf32> to vector<16x32xf32>
    %167 = arith.mulf %165, %166 : vector<16x32xf32>
    %168 = vector.broadcast %149 : vector<1x32xf32> to vector<16x32xf32>
    %169 = arith.addf %167, %168 : vector<16x32xf32>
    %170 = arith.truncf %169 : vector<16x32xf32> to vector<16x32xbf16>
    %c0_65 = arith.constant 0 : index
    %c0_66 = arith.constant 0 : index
    %c0_67 = arith.constant 0 : index
    %171 = vector.load %arg9[%c0_65, %c0_66, %c0_67] : memref<1x32x64xbf16, #tpu.memory_space<vmem>>, vector<1x32x64xbf16>
    %172 = vector.shape_cast %171 : vector<1x32x64xbf16> to vector<32x64xbf16>
    %cst_68 = arith.constant dense<0.000000e+00> : vector<16x64xf32>
    %173 = tpu.matmul %170, %172, %cst_68 {dimension_numbers = #tpu.dot_dimension_numbers<[1], [0], [0], [1], [0, 0, 1, 1], [], []>} : vector<16x32xbf16>, vector<32x64xbf16>, vector<16x64xf32> -> vector<16x64xf32>
    %c0_69 = arith.constant 0 : index
    %c0_70 = arith.constant 0 : index
    %c0_71 = arith.constant 0 : index
    %174 = vector.load %arg10[%c0_69, %c0_70, %c0_71] : memref<1x1x64xf32, #tpu.memory_space<vmem>>, vector<1x1x64xf32>
    %175 = vector.shape_cast %174 : vector<1x1x64xf32> to vector<1x64xf32>
    %176 = vector.broadcast %175 : vector<1x64xf32> to vector<16x64xf32>
    %177 = arith.addf %173, %176 : vector<16x64xf32>
    %cst_72 = arith.constant 5.000000e-01 : f32
    %178 = vector.broadcast %cst_72 : f32 to vector<16x64xf32>
    %179 = arith.mulf %178, %177 : vector<16x64xf32>
    %cst_73 = arith.constant 4.471500e-02 : f32
    %180 = vector.broadcast %cst_73 : f32 to vector<16x64xf32>
    %181 = arith.mulf %180, %177 : vector<16x64xf32>
    %182 = arith.mulf %181, %177 : vector<16x64xf32>
    %183 = arith.mulf %182, %177 : vector<16x64xf32>
    %184 = arith.addf %177, %183 : vector<16x64xf32>
    %cst_74 = arith.constant 0.797884583 : f32
    %185 = vector.broadcast %cst_74 : f32 to vector<16x64xf32>
    %186 = arith.mulf %185, %184 : vector<16x64xf32>
    %187 = math.tanh %186 : vector<16x64xf32>
    %cst_75 = arith.constant 1.000000e+00 : f32
    %188 = vector.broadcast %cst_75 : f32 to vector<16x64xf32>
    %189 = arith.addf %188, %187 : vector<16x64xf32>
    %190 = arith.mulf %179, %189 : vector<16x64xf32>
    %191 = arith.truncf %190 : vector<16x64xf32> to vector<16x64xbf16>
    %c0_76 = arith.constant 0 : index
    %c0_77 = arith.constant 0 : index
    %c0_78 = arith.constant 0 : index
    %192 = vector.load %arg11[%c0_76, %c0_77, %c0_78] : memref<1x64x32xbf16, #tpu.memory_space<vmem>>, vector<1x64x32xbf16>
    %193 = vector.shape_cast %192 : vector<1x64x32xbf16> to vector<64x32xbf16>
    %cst_79 = arith.constant dense<0.000000e+00> : vector<16x32xf32>
    %194 = tpu.matmul %191, %193, %cst_79 {dimension_numbers = #tpu.dot_dimension_numbers<[1], [0], [0], [1], [0, 0, 1, 1], [], []>} : vector<16x64xbf16>, vector<64x32xbf16>, vector<16x32xf32> -> vector<16x32xf32>
    %c0_80 = arith.constant 0 : index
    %c0_81 = arith.constant 0 : index
    %c0_82 = arith.constant 0 : index
    %195 = vector.load %arg12[%c0_80, %c0_81, %c0_82] : memref<1x1x32xf32, #tpu.memory_space<vmem>>, vector<1x1x32xf32>
    %196 = vector.shape_cast %195 : vector<1x1x32xf32> to vector<1x32xf32>
    %197 = vector.broadcast %196 : vector<1x32xf32> to vector<16x32xf32>
    %198 = arith.addf %194, %197 : vector<16x32xf32>
    %199 = arith.addf %198, %169 : vector<16x32xf32>
    %c0_83 = arith.constant 0 : index
    %c0_84 = arith.constant 0 : index
    %c0_85 = arith.constant 0 : index
    %200 = vector.load %arg13[%c0_83, %c0_84, %c0_85] : memref<1x1x32xf32, #tpu.memory_space<vmem>>, vector<1x1x32xf32>
    %201 = vector.shape_cast %200 : vector<1x1x32xf32> to vector<1x32xf32>
    %c0_86 = arith.constant 0 : index
    %c0_87 = arith.constant 0 : index
    %c0_88 = arith.constant 0 : index
    %202 = vector.load %arg14[%c0_86, %c0_87, %c0_88] : memref<1x1x32xf32, #tpu.memory_space<vmem>>, vector<1x1x32xf32>
    %203 = vector.shape_cast %202 : vector<1x1x32xf32> to vector<1x32xf32>
    %cst_89 = arith.constant dense<0.000000e+00> : vector<16xf32>
    %204 = vector.multi_reduction <add>, %199, %cst_89 [1] : vector<16x32xf32> to vector<16xf32>
    %205 = vector.shape_cast %204 : vector<16xf32> to vector<16x1xf32>
    %cst_90 = arith.constant 3.200000e+01 : f32
    %206 = vector.broadcast %cst_90 : f32 to vector<16x1xf32>
    %207 = arith.divf %205, %206 : vector<16x1xf32>
    %208 = vector.broadcast %207 : vector<16x1xf32> to vector<16x32xf32>
    %209 = arith.subf %199, %208 : vector<16x32xf32>
    %210 = arith.mulf %209, %209 : vector<16x32xf32>
    %cst_91 = arith.constant dense<0.000000e+00> : vector<16xf32>
    %211 = vector.multi_reduction <add>, %210, %cst_91 [1] : vector<16x32xf32> to vector<16xf32>
    %212 = vector.shape_cast %211 : vector<16xf32> to vector<16x1xf32>
    %cst_92 = arith.constant 3.200000e+01 : f32
    %213 = vector.broadcast %cst_92 : f32 to vector<16x1xf32>
    %214 = arith.divf %212, %213 : vector<16x1xf32>
    %cst_93 = arith.constant 9.99999996E-13 : f32
    %215 = vector.broadcast %cst_93 : f32 to vector<16x1xf32>
    %216 = arith.addf %214, %215 : vector<16x1xf32>
    %217 = math.rsqrt %216 : vector<16x1xf32>
    %218 = vector.broadcast %217 : vector<16x1xf32> to vector<16x32xf32>
    %219 = arith.mulf %209, %218 : vector<16x32xf32>
    %220 = vector.broadcast %201 : vector<1x32xf32> to vector<16x32xf32>
    %221 = arith.mulf %219, %220 : vector<16x32xf32>
    %222 = vector.broadcast %203 : vector<1x32xf32> to vector<16x32xf32>
    %223 = arith.addf %221, %222 : vector<16x32xf32>
    %c0_94 = arith.constant 0 : index
    %c0_95 = arith.constant 0 : index
    %224 = vector.load %arg17[%c0_94, %c0_95] : memref<16x32xf32, #tpu.memory_space<vmem>>, vector<16x32xf32>
    tpu.vector_store %arg17[%c0_94, %c0_95], %223 {strides = array<i32>} : memref<16x32xf32, #tpu.memory_space<vmem>>, vector<16x32xf32>,
    %c0_96 = arith.constant 0 : index
    %c0_97 = arith.constant 0 : index
    %c0_98 = arith.constant 0 : index
    %225 = vector.load %arg15[%c0_96, %c0_97, %c0_98] : memref<1x16x32xf32, #tpu.memory_space<vmem>>, vector<1x16x32xf32>
    %226 = vector.shape_cast %225 : vector<1x16x32xf32> to vector<16x32xf32>
    %227 = vector.shape_cast %223 : vector<16x32xf32> to vector<1x16x32xf32>
    tpu.vector_store %arg15[%c0_96, %c0_97, %c0_98], %227 {strides = array<i32>} : memref<1x16x32xf32, #tpu.memory_space<vmem>>, vector<1x16x32xf32>,
    return
  }
  func.func @transform_0(%arg0: i32) -> (i32, i32) {
    %c0_i32 = arith.constant 0 : i32
    %c0_i32_0 = arith.constant 0 : i32
    %c0_i32_1 = arith.constant 0 : i32
    return %c0_i32, %c0_i32_0 : i32, i32
  }
  func.func @transform_1(%arg0: i32) -> (i32, i32, i32) {
    %c0_i32 = arith.constant 0 : i32
    %c0_i32_0 = arith.constant 0 : i32
    %c0_i32_1 = arith.constant 0 : i32
    %c0_i32_2 = arith.constant 0 : i32
    return %c0_i32, %c0_i32_0, %c0_i32_1 : i32, i32, i32
  }
  func.func @transform_2(%arg0: i32) -> (i32, i32, i32) {
    %c0_i32 = arith.constant 0 : i32
    %c0_i32_0 = arith.constant 0 : i32
    %c0_i32_1 = arith.constant 0 : i32
    return %arg0, %c0_i32, %c0_i32_0 : i32, i32, i32
  }
  func.func @transform_3(%arg0: i32) -> (i32, i32, i32) {
    %c0_i32 = arith.constant 0 : i32
    %c0_i32_0 = arith.constant 0 : i32
    %c0_i32_1 = arith.constant 0 : i32
    return %arg0, %c0_i32, %c0_i32_0 : i32, i32, i32
  }
  func.func @transform_4(%arg0: i32) -> (i32, i32, i32) {
    %c0_i32 = arith.constant 0 : i32
    %c0_i32_0 = arith.constant 0 : i32
    %c0_i32_1 = arith.constant 0 : i32
    return %arg0, %c0_i32, %c0_i32_0 : i32, i32, i32
  }
  func.func @transform_5(%arg0: i32) -> (i32, i32, i32) {
    %c0_i32 = arith.constant 0 : i32
    %c0_i32_0 = arith.constant 0 : i32
    %c0_i32_1 = arith.constant 0 : i32
    return %arg0, %c0_i32, %c0_i32_0 : i32, i32, i32
  }
  func.func @transform_6(%arg0: i32) -> (i32, i32, i32) {
    %c0_i32 = arith.constant 0 : i32
    %c0_i32_0 = arith.constant 0 : i32
    %c0_i32_1 = arith.constant 0 : i32
    return %arg0, %c0_i32, %c0_i32_0 : i32, i32, i32
  }
  func.func @transform_7(%arg0: i32) -> (i32, i32, i32) {
    %c0_i32 = arith.constant 0 : i32
    %c0_i32_0 = arith.constant 0 : i32
    %c0_i32_1 = arith.constant 0 : i32
    return %arg0, %c0_i32, %c0_i32_0 : i32, i32, i32
  }
  func.func @transform_8(%arg0: i32) -> (i32, i32, i32) {
    %c0_i32 = arith.constant 0 : i32
    %c0_i32_0 = arith.constant 0 : i32
    %c0_i32_1 = arith.constant 0 : i32
    return %arg0, %c0_i32, %c0_i32_0 : i32, i32, i32
  }
  func.func @transform_9(%arg0: i32) -> (i32, i32, i32) {
    %c0_i32 = arith.constant 0 : i32
    %c0_i32_0 = arith.constant 0 : i32
    %c0_i32_1 = arith.constant 0 : i32
    return %arg0, %c0_i32, %c0_i32_0 : i32, i32, i32
  }
  func.func @transform_10(%arg0: i32) -> (i32, i32, i32) {
    %c0_i32 = arith.constant 0 : i32
    %c0_i32_0 = arith.constant 0 : i32
    %c0_i32_1 = arith.constant 0 : i32
    return %arg0, %c0_i32, %c0_i32_0 : i32, i32, i32
  }
  func.func @transform_11(%arg0: i32) -> (i32, i32, i32) {
    %c0_i32 = arith.constant 0 : i32
    %c0_i32_0 = arith.constant 0 : i32
    %c0_i32_1 = arith.constant 0 : i32
    return %arg0, %c0_i32, %c0_i32_0 : i32, i32, i32
  }
  func.func @transform_12(%arg0: i32) -> (i32, i32, i32) {
    %c0_i32 = arith.constant 0 : i32
    %c0_i32_0 = arith.constant 0 : i32
    %c0_i32_1 = arith.constant 0 : i32
    return %arg0, %c0_i32, %c0_i32_0 : i32, i32, i32
  }
  func.func @transform_13(%arg0: i32) -> (i32, i32, i32) {
    %c0_i32 = arith.constant 0 : i32
    %c0_i32_0 = arith.constant 0 : i32
    %c0_i32_1 = arith.constant 0 : i32
    return %arg0, %c0_i32, %c0_i32_0 : i32, i32, i32
  }
  func.func @transform_14(%arg0: i32) -> (i32, i32, i32) {
    %c0_i32 = arith.constant 0 : i32
    %c0_i32_0 = arith.constant 0 : i32
    %c0_i32_1 = arith.constant 0 : i32
    return %arg0, %c0_i32, %c0_i32_0 : i32, i32, i32
  }
  func.func @transform_15(%arg0: i32) -> (i32, i32, i32, i32) {
    %c0_i32 = arith.constant 0 : i32
    %c0_i32_0 = arith.constant 0 : i32
    %c0_i32_1 = arith.constant 0 : i32
    %c0_i32_2 = arith.constant 0 : i32
    return %arg0, %c0_i32, %c0_i32_0, %c0_i32_1 : i32, i32, i32, i32
  }
}

</mosaic_0001>

<bundles_post_ra>
// kernel: _lambda_.1
= control target key start
LH: loop header
LB: loop body
LE: loop exit
PB: predicated region body
PF: predicated region fallthrough
CT: control target
= control target key end

     0   :  { %s2669_s18 = smov 0   ;;  %s3012_s0 = inlined_call_operand.vmem [shape: f32[16,32], index: 0, kind: input, shape index: {}]   ;;  %s3013_s1 = inlined_call_operand.vmem [shape: f32[2,1,8], index: 1, kind: input, shape index: {}]   ;;  %s3014_s2 = inlined_call_operand.vmem [shape: bf16[2,32,96], index: 2, kind: input, shape index: {}]   ;;  %s3015_s3 = inlined_call_operand.vmem [shape: f32[2,1,96], index: 3, kind: input, shape index: {}]   ;;  %s3016_s4 = inlined_call_operand.vmem [shape: bf16[2,32,32], index: 4, kind: input, shape index: {}]   ;;  %s3017_s5 = inlined_call_operand.vmem [shape: f32[2,1,32], index: 5, kind: input, shape index: {}]   ;;  %s3018_s6 = inlined_call_operand.vmem [shape: f32[2,1,32], index: 6, kind: input, shape index: {}]   ;;  %s3019_s7 = inlined_call_operand.vmem [shape: f32[2,1,32], index: 7, kind: input, shape index: {}]   ;;  %s3020_s8 = inlined_call_operand.vmem [shape: bf16[2,32,64], index: 8, kind: input, shape index: {}]   ;;  %s3021_s9 = inlined_call_operand.vmem [shape: f32[2,1,64], index: 9, kind: input, shape index: {}]   ;;  %s3022_s10 = inlined_call_operand.vmem [shape: bf16[2,64,32], index: 10, kind: input, shape index: {}]   ;;  %s3023_s11 = inlined_call_operand.vmem [shape: f32[2,1,32], index: 11, kind: input, shape index: {}]   ;;  %s3024_s12 = inlined_call_operand.vmem [shape: f32[2,1,32], index: 12, kind: input, shape index: {}]   ;;  %s3025_s13 = inlined_call_operand.vmem [shape: f32[2,1,32], index: 13, kind: input, shape index: {}]   ;;  %s3026_s14 = inlined_call_operand.vmem [shape: f32[2,16,32], index: 14, kind: output, shape index: {0}]   ;;  %s3027_s15 = inlined_call_operand.vmem [shape: f32[2,4,16,8], index: 15, kind: output, shape index: {1}]  }
   0x1   :  { %3031 = sst [smem:[#allocation5_spill]] %s3012_s0 }
   0x2   :  { %3032 = sst [smem:[#allocation6_spill]] %s3013_s1 }
   0x3   :  { %3033 = sst [smem:[#allocation7_spill]] %s3014_s2 }
   0x4   :  { %3034 = sst [smem:[#allocation8_spill]] %s3016_s4 }
   0x5   :  { %3035 = sst [smem:[#allocation9_spill]] %s3019_s7 }
   0x6   :  { %3036 = sst [smem:[#allocation10_spill]] %s3020_s8 }
   0x7   :  { %3037 = sst [smem:[#allocation11_spill]] %s3021_s9 }
   0x8   :  { %3038 = sst [smem:[#allocation12_spill]] %s3022_s10 }
   0x9   :  { %3039 = sst [smem:[#allocation13_spill]] %s3026_s14 }
   0xa   :  { %3040 = sst [smem:[#allocation14_spill]] %s3027_s15 }
   0xb LB: > { %3041 = sst [smem:[#allocation4_spill]] %s2571_s18  ;;  %s2237_s19 = sadd.s32 4294967295, %s2571_s18   ;;  %s2571_s18 = sphi %s2669_s18, %s26_s18  }
   0xc   : > { %p2241_p0 = scmp.ge.s32.totalorder %s2571_s18, 1  ;;  %p534_p1 = scmp.lt.s32.totalorder %s2571_s18, 3 }
   0xe   : > { %p535_p2 = pnand %p2241_p0, %p534_p1 }
   0xf   : > { %p626_p3 = scmp.lt.s32.totalorder (!%p535_p2), %s2237_s19, 1  ;;  %s3042_s2 = sld [smem:[#allocation7_spill]] (!%p535_p2) }
  0x10   : > { %538 = sbr.rel (%p535_p2) target bundleno = 4181 (0x1055), region = 76  ;;  %s3043_s4 = sld [smem:[#allocation8_spill]] (!%p535_p2) }
  0x11   : > { %s3045_s8 = sld [smem:[#allocation10_spill]] (!%p535_p2)  ;;  %s3047_s10 = sld [smem:[#allocation12_spill]] (!%p535_p2) }
  0x12   : > { %p2254_p4 = scmp.ne.s32.totalorder (!%p535_p2), %s2237_s19, 0 }
  0x17   : > { %s2677_s20 = scalar_select %p626_p3, %s2237_s19, 1 }
  0x18   : > { %s3050_s1 = sld [smem:[#allocation5_spill]] (!%p2254_p4)  ;;  %vm687_vm0 = vcmask (!%p2254_p4), 261120  }
  0x19   : > { %s2303_s21 = sshll.u32 %s2677_s20, 4  ;;  %s663_s14 = scalar_lea.vmem %s3023_s11, %s2677_s20 }
  0x1a   : > { %s630_s27 = scalar_lea.vmem %s3042_s2, %s2303_s21  ;;  %s2690_s30 = scalar_lea.vmem %s3043_s4, %s2303_s21 }
  0x1b   : > { %s2707_s26 = scalar_lea.vmem %s3045_s8, %s2303_s21  ;;  %s2306_s4 = sshll.u32 %s2677_s20, 5 }
  0x1c   : > { %s2717_s18 = scalar_lea.vmem %s3047_s10, %s2306_s4  ;;  %s666_s24 = scalar_lea.vmem %s3024_s12, %s2677_s20 }
  0x1d   : > { %s669_s8 = scalar_lea.vmem %s3025_s13, %s2677_s20  ;;  %s3048_s2 = sld [smem:[#allocation13_spill]] }
  0x1e   : > { %s2308_s16 = sshll.u32 %s2677_s20, 6  ;;  %s3049_s10 = sld [smem:[#allocation14_spill]]  ;;  %v685_v0 = vld [vmem:[%s3050_s1] sm:$0xff] (!%p2254_p4)  ;;  %v686_v1 = vld [vmem:[%s3050_s1 + $0x8] sm:$0xff] (!%p2254_p4) }
  0x1f   : > { %684 = sbr.rel (%p2254_p4) target bundleno = 38 (0x26), region = 80  ;;  %688 = vst.msk [vmem:[#allocation2] sm:$0xff] (!%p2254_p4), %vm687_vm0, %v685_v0  ;;  %689 = vst.msk [vmem:[#allocation2 + $0x8] sm:$0xff] (!%p2254_p4), %vm687_vm0, %v686_v1 }
  0x23   : > { %s2734_s9 = scalar_lea.vmem %s3048_s2, %s2303_s21 }
  0x24   : > { %s2740_s7 = scalar_lea.vmem %s3049_s10, %s2308_s16 }
  0x26 PF: > { %v2511_v2 = vld [vmem:[%s630_s27] sm:$0xff]   ;;  %v2573_v3 = vmov 0.0   ;;  %v2512_v4 = vld [vmem:[%s630_s27 + $0x8] sm:$0xff]   ;;  %vm2574_vm1 = vmmov 0   ;;  %vm716_vm2 = vcmask 261120   ;;  %s3051_s19 = scalar_lea.vmem %s3015_s3, %s2677_s20  ;;  %s2575_s21 = smov 96  }
  0x27   : > { %2355 = vmatprep.subr.bf16.mxu0 %v2573_v3  ;;  %2363 = vmatprep.subr.bf16.mxu1 %v2573_v3  ;;  %v2752_v5 = vld [vmem:[#allocation2] sm:$0xff]  ;;  %v2754_v6 = vld [vmem:[#allocation2 + $0x8] sm:$0xff]  ;;  %vm780_vm3 = vcmask 64512   ;;  %s3052_s28 = sld [smem:[#allocation6_spill]]  ;;  %s2576_s4 = smov 64   ;;  %vm907_vm4 = vcmask 1043456  }
  0x28   : > { %2356 = vmatpush3.bf16.msra.mxu0 %v2511_v2  ;;  %2359 = vmatprep.mubr.msk.bf16.mxu0 %vm2574_vm1, %v2573_v3  ;;  %v692_v7 = vpack.c.bf16 %v2754_v6, %v2752_v5  ;;  %v2255_v8 = vld [vmem:[%s3051_s19] ss:$0 sm:$0xff]  ;;  %s2577_s17 = smov 88   ;;  %s2578_s0 = smov 120   ;;  %vm1232_vm5 = vcmask 130112   ;;  %vm1466_vm6 = vcmask 195712  }
  0x29   : > { %2357 = vmatprep.subr.bf16.mxu0 %v2573_v3  ;;  %2365 = vmatprep.mubr.msk.bf16.mxu1 %vm2574_vm1, %v2573_v3  ;;  %s2579_s23 = smov 56   ;;  %s2580_s15 = smov 80   ;;  %vm1700_vm7 = vcmask 261312   ;;  %vm1946_vm8 = vcmask 523264  }
  0x2a   : > { %s2581_s22 = smov 112   ;;  %s2582_s2 = smov 48  }
  0x2b   : > { %s2583_s10 = smov 72   ;;  %s2584_s19 = smov 104  }
  0x2c   : > { %2358 = vmatpush3.bf16.msra.mxu0 %v2512_v4  ;;  %s2586_s27 = smov 8   ;;  %s2587_s25 = smov 16  }
  0x2d   : > { %2369 = vmatprep.subr.bf16.mxu0 %v2573_v3  ;;  %v2791_v21 = vld [vmem:[%s3052_s28] ss:$0 sm:$0xff]  ;;  %v2797_v26 = vld [vmem:[%s3052_s28 + $0x1] ss:$0 sm:$0xff]  ;;  %s2588_s29 = smov 24   ;;  %s3053_s16 = scalar_lea.vmem %s3017_s5, %s2677_s20 }
  0x2f   : > { %2360 = vmatmul.mubr.msk.bf16.vlgmr.msra.gmra.mrb[0].mxu0 %vm716_vm2, %v692_v7 }
  0x30   : > { %2371 = vmatprep.mubr.msk.bf16.mxu0 %vm2574_vm1, %v2573_v3 }
 0x102   : > { %v754_v9 = vpop.f32.mrb[0].mxu0 }
 0x103   : > { %v755_v10 = vadd.f32 %v2255_v8, %v754_v9  ;;  %v2361_v11 = vpop.f32.mrb[1].mxu0 }
 0x104   : > { %v757_v12 = vpop.f32.mrb[2].mxu0 }
 0x105   : > { %v2770_v13 = vpack.c.bf16 %v755_v10, %v755_v10  ;;  %v758_v14 = vadd.f32 %v2255_v8, %v757_v12  ;;  %v2362_v15 = vpop.f32.mrb[3].mxu0 }
 0x107   : > { %778 = vrot.lane.b32.xlu0 %v2770_v13, %s2575_s21  ;;  %v2773_v16 = vpack.c.bf16 %v758_v14, %v758_v14 }
 0x10b   : > { %828 = vrot.lane.b32.xlu0 %v2773_v16, %s2575_s21  ;;  %s2585_s21 = smov 40  }
 0x179   : > { %v779_v17 = vpop.permute.xlu0 %778 }
 0x17a   : > { %v785_v18 = vsel %vm780_vm3, %v779_v17, 0 }
 0x17b   : > { %2364 = vmatpush3.bf16.xpose.msra.mxu1 %v785_v18 }
 0x17c   : > { %2375 = vmatprep.subr.bf16.mxu1 %v2573_v3 }
 0x17d   : > { %v829_v19 = vpop.permute.xlu0 %828 }
 0x17e   : > { %v834_v20 = vsel %vm780_vm3, %v829_v19, 0 }
 0x17f   : > { %2370 = vmatpush3.bf16.xpose.msra.mxu0 %v834_v20 }
 0x180   : > { %2381 = vmatprep.subr.bf16.mxu0 %v2573_v3 }
 0x182   : > { %2366 = vmatmul.mubr.msk.bf16.vlgmr.msra.gmra.mrb[0].mxu1 %vm780_vm3, %v2770_v13 }
 0x183   : > { %2377 = vmatprep.mubr.msk.bf16.mxu1 %vm2574_vm1, %v2573_v3 }
 0x186   : > { %2372 = vmatmul.mubr.msk.bf16.vlgmr.msra.gmra.mrb[4].mxu0 %vm780_vm3, %v2773_v16 }
 0x187   : > { %2383 = vmatprep.mubr.msk.bf16.mxu0 %vm2574_vm1, %v2573_v3 }
 0x255   : > { %v821_v22 = vpop.f32.mrb[0].mxu1 }
 0x256   : > { %v822_v23 = vadd.f32 %v2791_v21, %v821_v22  ;;  %v2367_v24 = vpop.f32.mrb[1].mxu1 }
 0x257   : > { %v824_v25 = vpop.f32.mrb[2].mxu1 }
 0x258   : > { %v2368_v27 = vpop.f32.mrb[3].mxu1  ;;  %v876_v28 = vsel %vm780_vm3, %v822_v23, -inf }
 0x259   : > { %877 = vmax.xlane.f32.xlu1 %v876_v28  ;;  %v870_v29 = vpop.f32.mrb[4].mxu0 }
 0x25a   : > { %v871_v30 = vadd.f32 %v2797_v26, %v870_v29  ;;  %v2373_v31 = vpop.f32.mrb[5].mxu0 }
 0x25b   : > { %v873_v32 = vpop.f32.mrb[6].mxu0 }
 0x25c   : > { %v2374_v33 = vpop.f32.mrb[7].mxu0  ;;  %v879_v34 = vsel %vm780_vm3, %v871_v30, -inf }
 0x25d   : > { %880 = vmax.xlane.f32.xlu1 %v879_v34 }
 0x26e   : > { %902 = vrot.lane.b32.xlu1 %v2770_v13, %s2576_s4 }
 0x272   : > { %951 = vrot.lane.b32.xlu1 %v2773_v16, %s2576_s4 }
 0x276   : > { %1003 = vrot.lane.b32.xlu1 %v2770_v13, %s2577_s17 }
 0x2e6   : > { %v878_v35 = vpop.xlane.xlu1 %877 }
 0x2e7   : > { %v882_v36 = vsub.f32 %v822_v23, %v878_v35 }
 0x2e9   : > { %v884_v37 = vmul.f32 1.442695, %v882_v36 }
 0x2ea   : > { %v881_v38 = vpop.xlane.xlu1 %880 }
 0x2eb   : > { %2521 = vpow2.f32 %v884_v37  ;;  %v883_v39 = vsub.f32 %v871_v30, %v881_v38 }
 0x2ed   : > { %v886_v40 = vmul.f32 1.442695, %v883_v39 }
 0x2ee   : > { %v903_v41 = vpop.permute.xlu1 %902 }
 0x2ef   : > { %2523 = vpow2.f32 %v886_v40  ;;  %v909_v42 = vsel %vm907_vm4, %v903_v41, 0 }
 0x2f0   : > { %2376 = vmatpush3.bf16.msra.mxu1 %v909_v42 }
 0x2f1   : > { %2387 = vmatprep.subr.bf16.mxu1 %v2573_v3 }
 0x2f2   : > { %v952_v43 = vpop.permute.xlu1 %951 }
 0x2f3   : > { %v957_v44 = vsel %vm907_vm4, %v952_v43, 0 }
 0x2f4   : > { %2382 = vmatpush3.bf16.msra.mxu0 %v957_v44 }
 0x2f5   : > { %v2522_v45 = vpop.eup %2521  ;;  %2393 = vmatprep.subr.bf16.mxu0 %v2573_v3 }
 0x2f6   : > { %v888_v46 = vsel %vm780_vm3, %v2522_v45, 0.0  ;;  %v1004_v49 = vpop.permute.xlu1 %1003 }
 0x2f7   : > { %889 = vadd.xlane.f32.xlu0 %v888_v46  ;;  %v1009_v56 = vsel %vm780_vm3, %v1004_v49, 0 }
 0x2f9   : > { %v2524_v47 = vpop.eup %2523 }
 0x2fa   : > { %v891_v48 = vsel %vm780_vm3, %v2524_v47, 0.0 }
 0x2fb   : > { %892 = vadd.xlane.f32.xlu1 %v891_v48 }
 0x30c   : > { %1053 = vrot.lane.b32.xlu1 %v2773_v16, %s2577_s17 }
 0x30d   : > { %1001 = vrot.lane.b32.xlu0 %v2770_v13, %s2578_s0 }
 0x310   : > { %1051 = vrot.lane.b32.xlu1 %v2773_v16, %s2578_s0 }
 0x384   : > { %v890_v50 = vpop.xlane.xlu0 %889 }
 0x385   : > { %2525 = vrcp.f32 %v890_v50 }
 0x388   : > { %v893_v51 = vpop.xlane.xlu1 %892  ;;  %v1002_v61 = vpop.permute.xlu0 %1001 }
 0x389   : > { %2527 = vrcp.f32 %v893_v51 }
 0x38c   : > { %v1054_v58 = vpop.permute.xlu1 %1053 }
 0x38d   : > { %v1059_v60 = vsel %vm780_vm3, %v1054_v58, 0 }
 0x38f   : > { %v2526_v52 = vpop.eup %2525 }
 0x390   : > { %v896_v53 = vmul.f32 %v2526_v52, %v2522_v45  ;;  %v1052_v62 = vpop.permute.xlu1 %1051 }
 0x392   : > { %898 = vst.msk [vmem:[%s2740_s7] sm:$0xff] %vm780_vm3, %v896_v53  ;;  %v900_v54 = vpack.c.bf16 %v896_v53, %v896_v53 }
 0x393   : > { %v2528_v55 = vpop.eup %2527 }
 0x394   : > { %v897_v57 = vmul.f32 %v2528_v55, %v2524_v47  ;;  %2378 = vmatmul.mubr.msk.bf16.vlgmr.msra.gmra.mrb[4].mxu1 %vm780_vm3, %v900_v54 }
 0x395   : > { %2388 = vmatpush3.bf16.xpose.msra.mxu1 %v1009_v56  ;;  %2389 = vmatprep.mubr.msk.bf16.mxu1 %vm2574_vm1, %v2573_v3 }
 0x396   : > { %899 = vst.msk [vmem:[%s2740_s7 + $0x8] sm:$0xff] %vm780_vm3, %v897_v57  ;;  %v901_v59 = vpack.c.bf16 %v897_v57, %v897_v57  ;;  %2399 = vmatprep.subr.bf16.mxu1 %v2573_v3 }
 0x398   : > { %2384 = vmatmul.mubr.msk.bf16.vlgmr.msra.gmra.mrb[8].mxu0 %vm780_vm3, %v901_v59 }
 0x399   : > { %2394 = vmatpush3.bf16.xpose.msra.mxu0 %v1059_v60  ;;  %2395 = vmatprep.mubr.msk.bf16.mxu0 %vm2574_vm1, %v2573_v3 }
 0x39a   : > { %2405 = vmatprep.subr.bf16.mxu0 %v2573_v3 }
 0x39c   : > { %2390 = vmatmul.mubr.msk.bf16.vlgmr.msra.gmra.mrb[8].mxu1 %vm780_vm3, %v1002_v61 }
 0x39d   : > { %2401 = vmatprep.mubr.msk.bf16.mxu1 %vm2574_vm1, %v2573_v3 }
 0x3a0   : > { %2396 = vmatmul.mubr.msk.bf16.vlgmr.msra.gmra.mrb[12].mxu0 %vm780_vm3, %v1052_v62 }
 0x3a1   : > { %2407 = vmatprep.mubr.msk.bf16.mxu0 %vm2574_vm1, %v2573_v3 }
 0x467   : > { %v945_v63 = vpop.f32.mrb[4].mxu1 }
 0x468   : > { %999 = vst.msk [vmem:[#allocation3] sm:$0xff] %vm780_vm3, %v945_v63  ;;  %v2379_v0 = vpop.f32.mrb[5].mxu1 }
 0x469   : > { %v948_v1 = vpop.f32.mrb[6].mxu1 }
 0x46a   : > { %v2380_v2 = vpop.f32.mrb[7].mxu1 }
 0x46b   : > { %v993_v4 = vpop.f32.mrb[8].mxu0 }
 0x46c   : > { %1000 = vst.msk [vmem:[#allocation3 + $0x8] sm:$0xff] %vm780_vm3, %v993_v4  ;;  %v2385_v7 = vpop.f32.mrb[9].mxu0 }
 0x46d   : > { %v996_v8 = vpop.f32.mrb[10].mxu0 }
 0x46e   : > { %v2386_v9 = vpop.f32.mrb[11].mxu0 }
 0x46f   : > { %v1045_v10 = vpop.f32.mrb[8].mxu1 }
 0x470   : > { %v1046_v11 = vadd.f32 %v2791_v21, %v1045_v10  ;;  %v2391_v12 = vpop.f32.mrb[9].mxu1 }
 0x471   : > { %v1048_v14 = vpop.f32.mrb[10].mxu1 }
 0x472   : > { %v2392_v15 = vpop.f32.mrb[11].mxu1  ;;  %v1101_v17 = vsel %vm780_vm3, %v1046_v11, -inf }
 0x473   : > { %1102 = vmax.xlane.f32.xlu1 %v1101_v17  ;;  %v1095_v18 = vpop.f32.mrb[12].mxu0 }
 0x474   : > { %v1096_v19 = vadd.f32 %v2797_v26, %v1095_v18  ;;  %v2397_v20 = vpop.f32.mrb[13].mxu0 }
 0x475   : > { %v1098_v22 = vpop.f32.mrb[14].mxu0 }
 0x476   : > { %v2398_v23 = vpop.f32.mrb[15].mxu0  ;;  %v1104_v24 = vsel %vm780_vm3, %v1096_v19, -inf }
 0x477   : > { %1105 = vmax.xlane.f32.xlu0 %v1104_v24 }
 0x484   : > { %1128 = vrot.lane.b32.xlu1 %v2770_v13, %s2579_s23 }
 0x488   : > { %1237 = vrot.lane.b32.xlu1 %v2770_v13, %s2580_s15 }
 0x48d   : > { %1176 = vrot.lane.b32.xlu0 %v2773_v16, %s2579_s23 }
 0x491   : > { %1235 = vrot.lane.b32.xlu0 %v2770_v13, %s2581_s22 }
 0x500   : > { %v1103_v25 = vpop.xlane.xlu1 %1102 }
 0x501   : > { %v1107_v27 = vsub.f32 %v1046_v11, %v1103_v25 }
 0x503   : > { %v1109_v28 = vmul.f32 1.442695, %v1107_v27 }
 0x504   : > { %v1129_v29 = vpop.permute.xlu1 %1128  ;;  %v1106_v30 = vpop.xlane.xlu0 %1105 }
 0x505   : > { %2529 = vpow2.f32 %v1109_v28  ;;  %v1134_v31 = vsel %vm907_vm4, %v1129_v29, 0  ;;  %v1108_v32 = vsub.f32 %v1096_v19, %v1106_v30 }
 0x506   : > { %2400 = vmatpush3.bf16.msra.mxu1 %v1134_v31 }
 0x507   : > { %v1111_v33 = vmul.f32 1.442695, %v1108_v32  ;;  %2411 = vmatprep.subr.bf16.mxu1 %v2573_v3 }
 0x508   : > { %v1177_v34 = vpop.permute.xlu0 %1176  ;;  %v1238_v40 = vpop.permute.xlu1 %1237 }
 0x509   : > { %2531 = vpow2.f32 %v1111_v33  ;;  %v1182_v35 = vsel %vm907_vm4, %v1177_v34, 0  ;;  %v1243_v47 = vsel %vm780_vm3, %v1238_v40, 0 }
 0x50a   : > { %2406 = vmatpush3.bf16.msra.mxu0 %v1182_v35 }
 0x50b   : > { %2417 = vmatprep.subr.bf16.mxu0 %v2573_v3 }
 0x50c   : > { %v1236_v52 = vpop.permute.xlu0 %1235 }
 0x50f   : > { %v2530_v36 = vpop.eup %2529 }
 0x510   : > { %v1113_v37 = vsel %vm780_vm3, %v2530_v36, 0.0 }
 0x511   : > { %1114 = vadd.xlane.f32.xlu1 %v1113_v37 }
 0x513   : > { %v2532_v38 = vpop.eup %2531 }
 0x514   : > { %v1116_v39 = vsel %vm780_vm3, %v2532_v38, 0.0 }
 0x515   : > { %1117 = vadd.xlane.f32.xlu1 %v1116_v39 }
 0x526   : > { %1287 = vrot.lane.b32.xlu1 %v2773_v16, %s2580_s15  ;;  %s3055_s15 = sld [smem:[#allocation9_spill]] }
 0x52a   : > { %1285 = vrot.lane.b32.xlu1 %v2773_v16, %s2581_s22 }
 0x52c   : > { %s3056_s22 = scalar_lea.vmem %s3055_s15, %s2677_s20 }
 0x59e   : > { %v1115_v41 = vpop.xlane.xlu1 %1114 }
 0x59f   : > { %2533 = vrcp.f32 %v1115_v41 }
 0x5a2   : > { %v1118_v42 = vpop.xlane.xlu1 %1117 }
 0x5a3   : > { %2535 = vrcp.f32 %v1118_v42 }
 0x5a6   : > { %v1288_v49 = vpop.permute.xlu1 %1287 }
 0x5a7   : > { %v1293_v51 = vsel %vm780_vm3, %v1288_v49, 0 }
 0x5a9   : > { %v2534_v43 = vpop.eup %2533 }
 0x5aa   : > { %v1121_v44 = vmul.f32 %v2534_v43, %v2530_v36  ;;  %v1286_v53 = vpop.permute.xlu1 %1285 }
 0x5ac   : > { %2267 = vst.msk [vmem:[%s2740_s7 + $0x10] sm:$0xff] %vm780_vm3, %v1121_v44  ;;  %v1126_v45 = vpack.c.bf16 %v1121_v44, %v1121_v44 }
 0x5ad   : > { %v2536_v46 = vpop.eup %2535 }
 0x5ae   : > { %v1122_v48 = vmul.f32 %v2536_v46, %v2532_v38  ;;  %2402 = vmatmul.mubr.msk.bf16.vlgmr.msra.gmra.mrb[12].mxu1 %vm780_vm3, %v1126_v45 }
 0x5af   : > { %2412 = vmatpush3.bf16.xpose.msra.mxu1 %v1243_v47  ;;  %2413 = vmatprep.mubr.msk.bf16.mxu1 %vm2574_vm1, %v2573_v3 }
 0x5b0   : > { %2268 = vst.msk [vmem:[%s2740_s7 + $0x18] sm:$0xff] %vm780_vm3, %v1122_v48  ;;  %v1127_v50 = vpack.c.bf16 %v1122_v48, %v1122_v48  ;;  %2423 = vmatprep.subr.bf16.mxu1 %v2573_v3 }
 0x5b2   : > { %2408 = vmatmul.mubr.msk.bf16.vlgmr.msra.gmra.mrb[16].mxu0 %vm780_vm3, %v1127_v50 }
 0x5b3   : > { %2418 = vmatpush3.bf16.xpose.msra.mxu0 %v1293_v51  ;;  %2419 = vmatprep.mubr.msk.bf16.mxu0 %vm2574_vm1, %v2573_v3 }
 0x5b4   : > { %2429 = vmatprep.subr.bf16.mxu0 %v2573_v3 }
 0x5b6   : > { %2414 = vmatmul.mubr.msk.bf16.vlgmr.msra.gmra.mrb[16].mxu1 %vm780_vm3, %v1236_v52 }
 0x5b7   : > { %2425 = vmatprep.mubr.msk.bf16.mxu1 %vm2574_vm1, %v2573_v3 }
 0x5ba   : > { %2420 = vmatmul.mubr.msk.bf16.vlgmr.msra.gmra.mrb[20].mxu0 %vm780_vm3, %v1286_v53 }
 0x5bb   : > { %2431 = vmatprep.mubr.msk.bf16.mxu0 %vm2574_vm1, %v2573_v3 }
 0x681   : > { %v2872_v54 = vpop.f32.mrb[12].mxu1 }
 0x682   : > { %v2403_v55 = vpop.f32.mrb[13].mxu1 }
 0x683   : > { %v1173_v56 = vpop.f32.mrb[14].mxu1 }
 0x684   : > { %v2404_v57 = vpop.f32.mrb[15].mxu1 }
 0x685   : > { %v2874_v58 = vpop.f32.mrb[16].mxu0 }
 0x686   : > { %v2409_v59 = vpop.f32.mrb[17].mxu0 }
 0x687   : > { %v1221_v60 = vpop.f32.mrb[18].mxu0 }
 0x688   : > { %v2410_v61 = vpop.f32.mrb[19].mxu0 }
 0x689   : > { %v1279_v62 = vpop.f32.mrb[16].mxu1 }
 0x68a   : > { %v1280_v63 = vadd.f32 %v2791_v21, %v1279_v62  ;;  %v2415_v0 = vpop.f32.mrb[17].mxu1 }
 0x68b   : > { %v1282_v1 = vpop.f32.mrb[18].mxu1 }
 0x68c   : > { %v2416_v2 = vpop.f32.mrb[19].mxu1  ;;  %v1335_v4 = vsel %vm780_vm3, %v1280_v63, -inf }
 0x68d   : > { %1336 = vmax.xlane.f32.xlu0 %v1335_v4  ;;  %v1329_v7 = vpop.f32.mrb[20].mxu0 }
 0x68e   : > { %v1330_v8 = vadd.f32 %v2797_v26, %v1329_v7  ;;  %v2421_v9 = vpop.f32.mrb[21].mxu0 }
 0x68f   : > { %v1332_v10 = vpop.f32.mrb[22].mxu0 }
 0x690   : > { %v2422_v11 = vpop.f32.mrb[23].mxu0  ;;  %v1338_v12 = vsel %vm780_vm3, %v1330_v8, -inf }
 0x691   : > { %1339 = vmax.xlane.f32.xlu1 %v1338_v12 }
 0x6a2   : > { %1362 = vrot.lane.b32.xlu1 %v2770_v13, %s2582_s2 }
 0x6a6   : > { %1471 = vrot.lane.b32.xlu1 %v2770_v13, %s2583_s10 }
 0x6aa   : > { %1521 = vrot.lane.b32.xlu1 %v2773_v16, %s2583_s10 }
 0x6ae   : > { %1519 = vrot.lane.b32.xlu1 %v2773_v16, %s2584_s19 }
 0x71a   : > { %v1337_v14 = vpop.xlane.xlu0 %1336 }
 0x71b   : > { %v1341_v15 = vsub.f32 %v1280_v63, %v1337_v14 }
 0x71d   : > { %v1343_v17 = vmul.f32 1.442695, %v1341_v15 }
 0x71e   : > { %v1340_v18 = vpop.xlane.xlu1 %1339 }
 0x71f   : > { %2537 = vpow2.f32 %v1343_v17  ;;  %v1342_v19 = vsub.f32 %v1330_v8, %v1340_v18 }
 0x721   : > { %v1345_v20 = vmul.f32 1.442695, %v1342_v19 }
 0x722   : > { %v1363_v22 = vpop.permute.xlu1 %1362 }
 0x723   : > { %2539 = vpow2.f32 %v1345_v20  ;;  %v1368_v23 = vsel %vm907_vm4, %v1363_v22, 0 }
 0x724   : > { %2424 = vmatpush3.bf16.msra.mxu1 %v1368_v23 }
 0x725   : > { %2435 = vmatprep.subr.bf16.mxu1 %v2573_v3 }
 0x726   : > { %v1472_v34 = vpop.permute.xlu1 %1471 }
 0x727   : > { %v1477_v38 = vsel %vm780_vm3, %v1472_v34, 0 }
 0x729   : > { %v2538_v24 = vpop.eup %2537 }
 0x72a   : > { %v1347_v25 = vsel %vm780_vm3, %v2538_v24, 0.0  ;;  %v1522_v40 = vpop.permute.xlu1 %1521 }
 0x72b   : > { %1348 = vadd.xlane.f32.xlu0 %v1347_v25  ;;  %v1527_v42 = vsel %vm780_vm3, %v1522_v40, 0 }
 0x72d   : > { %v2540_v27 = vpop.eup %2539 }
 0x72e   : > { %v1350_v28 = vsel %vm780_vm3, %v2540_v27, 0.0  ;;  %v1520_v44 = vpop.permute.xlu1 %1519 }
 0x72f   : > { %1351 = vadd.xlane.f32.xlu0 %v1350_v28 }
 0x745   : > { %1410 = vrot.lane.b32.xlu0 %v2773_v16, %s2582_s2 }
 0x749   : > { %1469 = vrot.lane.b32.xlu0 %v2770_v13, %s2584_s19  ;;  %s3057_s19 = sld [smem:[#allocation11_spill]] }
 0x7b8   : > { %v1349_v29 = vpop.xlane.xlu0 %1348 }
 0x7b9   : > { %2541 = vrcp.f32 %v1349_v29 }
 0x7bc   : > { %v1352_v30 = vpop.xlane.xlu0 %1351 }
 0x7bd   : > { %2543 = vrcp.f32 %v1352_v30  ;;  %v2513_v30 = vld [vmem:[%s2690_s30] sm:$0xff]  }
 0x7c0   : > { %v1411_v31 = vpop.permute.xlu0 %1410 }
 0x7c1   : > { %v1416_v32 = vsel %vm907_vm4, %v1411_v31, 0  ;;  %v2514_v31 = vld [vmem:[%s2690_s30 + $0x8] sm:$0xff]  }
 0x7c2   : > { %2430 = vmatpush3.bf16.msra.mxu0 %v1416_v32 }
 0x7c3   : > { %v2542_v33 = vpop.eup %2541  ;;  %2441 = vmatprep.subr.bf16.mxu0 %v2573_v3 }
 0x7c4   : > { %v1355_v35 = vmul.f32 %v2542_v33, %v2538_v24  ;;  %v1470_v43 = vpop.permute.xlu0 %1469 }
 0x7c6   : > { %2273 = vst.msk [vmem:[%s2740_s7 + $0x20] sm:$0xff] %vm780_vm3, %v1355_v35  ;;  %v1360_v36 = vpack.c.bf16 %v1355_v35, %v1355_v35 }
 0x7c7   : > { %v2544_v37 = vpop.eup %2543 }
 0x7c8   : > { %v1356_v39 = vmul.f32 %v2544_v37, %v2540_v27  ;;  %2426 = vmatmul.mubr.msk.bf16.vlgmr.msra.gmra.mrb[20].mxu1 %vm780_vm3, %v1360_v36 }
 0x7c9   : > { %2436 = vmatpush3.bf16.xpose.msra.mxu1 %v1477_v38  ;;  %2437 = vmatprep.mubr.msk.bf16.mxu1 %vm2574_vm1, %v2573_v3 }
 0x7ca   : > { %2274 = vst.msk [vmem:[%s2740_s7 + $0x28] sm:$0xff] %vm780_vm3, %v1356_v39  ;;  %v1361_v41 = vpack.c.bf16 %v1356_v39, %v1356_v39  ;;  %2447 = vmatprep.subr.bf16.mxu1 %v2573_v3 }
 0x7cc   : > { %2432 = vmatmul.mubr.msk.bf16.vlgmr.msra.gmra.mrb[24].mxu0 %vm780_vm3, %v1361_v41 }
 0x7cd   : > { %2442 = vmatpush3.bf16.xpose.msra.mxu0 %v1527_v42  ;;  %2443 = vmatprep.mubr.msk.bf16.mxu0 %vm2574_vm1, %v2573_v3 }
 0x7ce   : > { %2453 = vmatprep.subr.bf16.mxu0 %v2573_v3 }
 0x7d0   : > { %2438 = vmatmul.mubr.msk.bf16.vlgmr.msra.gmra.mrb[24].mxu1 %vm780_vm3, %v1470_v43 }
 0x7d1   : > { %2449 = vmatprep.mubr.msk.bf16.mxu1 %vm2574_vm1, %v2573_v3 }
 0x7d4   : > { %2444 = vmatmul.mubr.msk.bf16.vlgmr.msra.gmra.mrb[28].mxu0 %vm780_vm3, %v1520_v44 }
 0x7d5   : > { %2455 = vmatprep.mubr.msk.bf16.mxu0 %vm2574_vm1, %v2573_v3 }
 0x89b   : > { %v1404_v45 = vpop.f32.mrb[20].mxu1 }
 0x89c   : > { %v2427_v46 = vpop.f32.mrb[21].mxu1 }
 0x89d   : > { %v1407_v47 = vpop.f32.mrb[22].mxu1 }
 0x89e   : > { %v2428_v48 = vpop.f32.mrb[23].mxu1 }
 0x89f   : > { %v1452_v49 = vpop.f32.mrb[24].mxu0 }
 0x8a0   : > { %v2433_v50 = vpop.f32.mrb[25].mxu0 }
 0x8a1   : > { %v1455_v51 = vpop.f32.mrb[26].mxu0 }
 0x8a2   : > { %v2434_v52 = vpop.f32.mrb[27].mxu0 }
 0x8a3   : > { %v1513_v53 = vpop.f32.mrb[24].mxu1 }
 0x8a4   : > { %v1514_v55 = vadd.f32 %v2791_v21, %v1513_v53  ;;  %v2439_v56 = vpop.f32.mrb[25].mxu1 }
 0x8a5   : > { %v1516_v57 = vpop.f32.mrb[26].mxu1 }
 0x8a6   : > { %v2440_v59 = vpop.f32.mrb[27].mxu1  ;;  %v1569_v60 = vsel %vm780_vm3, %v1514_v55, -inf }
 0x8a7   : > { %1570 = vmax.xlane.f32.xlu0 %v1569_v60  ;;  %v1563_v61 = vpop.f32.mrb[28].mxu0 }
 0x8a8   : > { %v1564_v62 = vadd.f32 %v2797_v26, %v1563_v61  ;;  %v2445_v63 = vpop.f32.mrb[29].mxu0 }
 0x8a9   : > { %v1566_v0 = vpop.f32.mrb[30].mxu0 }
 0x8aa   : > { %v2446_v1 = vpop.f32.mrb[31].mxu0  ;;  %v1572_v2 = vsel %vm780_vm3, %v1564_v62, -inf }
 0x8ab   : > { %1573 = vmax.xlane.f32.xlu1 %v1572_v2 }
 0x8bc   : > { %1596 = vrot.lane.b32.xlu1 %v2770_v13, %s2585_s21 }
 0x8c0   : > { %1226 = vrot.lane.b32.xlu1 %v2872_v54, %s2586_s27 }
 0x8c4   : > { %1228 = vrot.lane.b32.xlu1 %v2874_v58, %s2586_s27 }
 0x8c8   : > { %1462 = vrot.lane.b32.xlu1 %v1452_v49, %s2587_s25 }
 0x934   : > { %v1571_v21 = vpop.xlane.xlu0 %1570 }
 0x935   : > { %v1575_v4 = vsub.f32 %v1514_v55, %v1571_v21  ;;  %v2516_v21 = vld [vmem:[%s2707_s26 + $0x8] sm:$0xff]  }
 0x937   : > { %v1577_v26 = vmul.f32 1.442695, %v1575_v4 }
 0x938   : > { %v1574_v7 = vpop.xlane.xlu1 %1573 }
 0x939   : > { %2545 = vpow2.f32 %v1577_v26  ;;  %v1576_v8 = vsub.f32 %v1564_v62, %v1574_v7 }
 0x93b   : > { %v1579_v9 = vmul.f32 1.442695, %v1576_v8 }
 0x93c   : > { %v1597_v10 = vpop.permute.xlu1 %1596 }
 0x93d   : > { %2547 = vpow2.f32 %v1579_v9  ;;  %v1602_v11 = vsel %vm907_vm4, %v1597_v10, 0 }
 0x93e   : > { %2448 = vmatpush3.bf16.msra.mxu1 %v1602_v11 }
 0x93f   : > { %2459 = vmatprep.subr.bf16.mxu1 %v2573_v3 }
 0x940   : > { %v1227_v13 = vpop.permute.xlu1 %1226 }
 0x941   : > { %1233 = vst.msk [vmem:[#allocation3] sm:$0xff] %vm1232_vm5, %v1227_v13 }
 0x943   : > { %v2546_v54 = vpop.eup %2545 }
 0x944   : > { %v1229_v58 = vpop.permute.xlu1 %1228  ;;  %v1581_v12 = vsel %vm780_vm3, %v2546_v54, 0.0 }
 0x945   : > { %1234 = vst.msk [vmem:[#allocation3 + $0x8] sm:$0xff] %vm1232_vm5, %v1229_v58  ;;  %1582 = vadd.xlane.f32.xlu0 %v1581_v12 }
 0x947   : > { %v2548_v14 = vpop.eup %2547 }
 0x948   : > { %v1463_v15 = vpop.permute.xlu1 %1462  ;;  %v1584_v17 = vsel %vm780_vm3, %v2548_v14, 0.0 }
 0x949   : > { %1468 = vst.msk [vmem:[#allocation3 + $0x8] sm:$0xff] %vm1466_vm6, %v1463_v15  ;;  %1585 = vadd.xlane.f32.xlu0 %v1584_v17  ;;  %v2288_v15 = vld [vmem:[%s3056_s22] ss:$0 sm:$0xff] }
 0x95f   : > { %1644 = vrot.lane.b32.xlu0 %v2773_v16, %s2585_s21  ;;  %s3058_s21 = scalar_lea.vmem %s3057_s19, %s2677_s20 }
 0x963   : > { %1460 = vrot.lane.b32.xlu0 %v1404_v45, %s2587_s25  ;;  %v2283_v45 = vld [vmem:[%s3053_s16] ss:$0 sm:$0xff] }
 0x9d2   : > { %v1583_v18 = vpop.xlane.xlu0 %1582 }
 0x9d3   : > { %2549 = vrcp.f32 %v1583_v18 }
 0x9d6   : > { %v1586_v19 = vpop.xlane.xlu0 %1585 }
 0x9d7   : > { %2551 = vrcp.f32 %v1586_v19 }
 0x9da   : > { %v1645_v20 = vpop.permute.xlu0 %1644 }
 0x9db   : > { %v1650_v22 = vsel %vm907_vm4, %v1645_v20, 0 }
 0x9dc   : > { %2454 = vmatpush3.bf16.msra.mxu0 %v1650_v22  ;;  %v2517_v22 = vld [vmem:[%s2717_s18] sm:$0xff]  }
 0x9dd   : > { %v2550_v23 = vpop.eup %2549  ;;  %2467 = vmatprep.subr.bf16.mxu0 %v2573_v3 }
 0x9de   : > { %v1589_v24 = vmul.f32 %v2550_v23, %v2546_v54  ;;  %v1461_v25 = vpop.permute.xlu0 %1460  ;;  %v2518_v23 = vld [vmem:[%s2717_s18 + $0x8] sm:$0xff]  }
 0x9df   : > { %1467 = vst.msk [vmem:[#allocation3] sm:$0xff] %vm1466_vm6, %v1461_v25  ;;  %v2520_v25 = vld [vmem:[%s2717_s18 + $0x18] sm:$0xff]  }
 0x9e0   : > { %2279 = vst.msk [vmem:[%s2740_s7 + $0x30] sm:$0xff] %vm780_vm3, %v1589_v24  ;;  %v1594_v16 = vpack.c.bf16 %v1589_v24, %v1589_v24  ;;  %v2519_v24 = vld [vmem:[%s2717_s18 + $0x10] sm:$0xff]  }
 0x9e1   : > { %v2552_v27 = vpop.eup %2551 }
 0x9e2   : > { %v1590_v28 = vmul.f32 %v2552_v27, %v2548_v14  ;;  %2450 = vmatmul.mubr.msk.bf16.vlgmr.msra.gmra.mrb[28].mxu1 %vm780_vm3, %v1594_v16  ;;  %v2289_v16 = vld [vmem:[%s3058_s21] ss:$0 sm:$0xff] }
 0x9e3   : > { %2463 = vmatprep.mubr.msk.bf16.mxu1 %vm2574_vm1, %v2573_v3  ;;  %2460 = vmatpush3.bf16.msra.mxu1 %v2513_v30 }
 0x9e4   : > { %2280 = vst.msk [vmem:[%s2740_s7 + $0x38] sm:$0xff] %vm780_vm3, %v1590_v28  ;;  %v1595_v29 = vpack.c.bf16 %v1590_v28, %v1590_v28  ;;  %2461 = vmatprep.subr.bf16.mxu1 %v2573_v3 }
 0x9e6   : > { %2456 = vmatmul.mubr.msk.bf16.vlgmr.msra.gmra.mrb[32].mxu0 %vm780_vm3, %v1595_v29 }
 0x9e7   : > { %2471 = vmatprep.mubr.msk.bf16.mxu0 %vm2574_vm1, %v2573_v3  ;;  %2462 = vmatpush3.bf16.msra.mxu1 %v2514_v31 }
 0x9e8   : > { %2475 = vmatprep.subr.bf16.mxu1 %v2573_v3 }
 0xab5   : > { %v1638_v32 = vpop.f32.mrb[28].mxu1 }
 0xab6   : > { %1694 = vrot.lane.b32.xlu0 %v1638_v32, %s2588_s29  ;;  %v2451_v33 = vpop.f32.mrb[29].mxu1 }
 0xab7   : > { %v1641_v34 = vpop.f32.mrb[30].mxu1 }
 0xab8   : > { %v2452_v35 = vpop.f32.mrb[31].mxu1 }
 0xab9   : > { %v1686_v36 = vpop.f32.mrb[32].mxu0 }
 0xaba   : > { %1696 = vrot.lane.b32.xlu1 %v1686_v36, %s2588_s29  ;;  %v2457_v37 = vpop.f32.mrb[33].mxu0 }
 0xabb   : > { %v1689_v38 = vpop.f32.mrb[34].mxu0 }
 0xabc   : > { %v2458_v39 = vpop.f32.mrb[35].mxu0 }
 0xb28   : > { %v1695_v40 = vpop.permute.xlu0 %1694 }
 0xb29   : > { %1701 = vst.msk [vmem:[#allocation3] sm:$0xff] %vm1700_vm7, %v1695_v40 }
 0xb2c   : > { %v1697_v41 = vpop.permute.xlu1 %1696 }
 0xb2d   : > { %1702 = vst.msk [vmem:[#allocation3 + $0x8] sm:$0xff] %vm1700_vm7, %v1697_v41 }
 0xb30   : > { %v1703_v42 = vld [vmem:[#allocation3] sm:$0xff] }
 0xb34   : > { %v1704_v43 = vld [vmem:[#allocation3 + $0x8] sm:$0xff] }
 0xb35   : > { %v1705_v44 = vpack.c.bf16 %v1704_v43, %v1703_v42 }
 0xb37   : > { %2464 = vmatmul.mubr.msk.bf16.vlgmr.msra.gmra.mrb[32].mxu1 %vm716_vm2, %v1705_v44 }
 0xb38   : > { %2483 = vmatprep.mubr.msk.bf16.mxu1 %vm2574_vm1, %v2573_v3  ;;  %2476 = vmatpush3.bf16.msra.mxu1 %v2517_v22 }
 0xb39   : > { %2477 = vmatprep.subr.bf16.mxu1 %v2573_v3 }
 0xb3c   : > { %2478 = vmatpush3.bf16.msra.mxu1 %v2518_v23 }
 0xb3d   : > { %2479 = vmatprep.subr.bf16.mxu1 %v2573_v3 }
 0xb40   : > { %2480 = vmatpush3.bf16.msra.mxu1 %v2519_v24 }
 0xb41   : > { %2481 = vmatprep.subr.bf16.mxu1 %v2573_v3 }
 0xb44   : > { %2482 = vmatpush3.bf16.msra.mxu1 %v2520_v25 }
 0xc0a   : > { %v1766_v46 = vpop.f32.mrb[32].mxu1 }
 0xc0b   : > { %v1767_v47 = vadd.f32 %v2283_v45, %v1766_v46  ;;  %v2465_v48 = vpop.f32.mrb[33].mxu1 }
 0xc0c   : > { %v1769_v49 = vpop.f32.mrb[34].mxu1 }
 0xc0d   : > { %v1770_v50 = vadd.f32 %v2283_v45, %v1769_v49  ;;  %v2466_v51 = vpop.f32.mrb[35].mxu1  ;;  %v1773_v52 = vadd.f32 %v1767_v47, %v2752_v5 }
 0xc0e   : > { %v2293_v51 = vld [vmem:[%s663_s14] ss:$0 sm:$0xff] }
 0xc0f   : > { %v1777_v53 = vsel %vm716_vm2, %v1773_v52, 0.0  ;;  %v1774_v55 = vadd.f32 %v1770_v50, %v2754_v6  ;;  %v2515_v6 = vld [vmem:[%s2707_s26] sm:$0xff]   ;;  %s3054_s26 = scalar_lea.vmem %s3018_s6, %s2677_s20 }
 0xc10   : > { %1778 = vadd.xlane.f32.xlu0 %v1777_v53  ;;  %2468 = vmatpush3.bf16.msra.mxu0 %v2515_v6  ;;  %v2287_v54 = vld [vmem:[%s3054_s26] ss:$0 sm:$0xff] }
 0xc11   : > { %v1780_v56 = vsel %vm716_vm2, %v1774_v55, 0.0  ;;  %2469 = vmatprep.subr.bf16.mxu0 %v2573_v3 }
 0xc12   : > { %1781 = vadd.xlane.f32.xlu1 %v1780_v56 }
 0xc14   : > { %2470 = vmatpush3.bf16.msra.mxu0 %v2516_v21 }
 0xc9d   : > { %v1779_v57 = vpop.xlane.xlu0 %1778 }
 0xc9e   : > { %v1784_v59 = vmul.f32 0.03125, %v1779_v57 }
 0xc9f   : > { %v1782_v60 = vpop.xlane.xlu1 %1781 }
 0xca0   : > { %v1786_v61 = vsub.f32 %v1773_v52, %v1784_v59  ;;  %v1785_v62 = vmul.f32 0.03125, %v1782_v60 }
 0xca2   : > { %v1787_v63 = vsub.f32 %v1774_v55, %v1785_v62  ;;  %v1788_v0 = vmul.f32 %v1786_v61, %v1786_v61 }
 0xca4   : > { %v1790_v1 = vsel %vm716_vm2, %v1788_v0, 0.0  ;;  %v1789_v5 = vmul.f32 %v1787_v63, %v1787_v63 }
 0xca5   : > { %1791 = vadd.xlane.f32.xlu0 %v1790_v1 }
 0xca6   : > { %v1793_v2 = vsel %vm716_vm2, %v1789_v5, 0.0 }
 0xca9   : > { %1794 = vadd.xlane.f32.xlu0 %v1793_v2 }
 0xd32   : > { %v1792_v4 = vpop.xlane.xlu0 %1791 }
 0xd33   : > { %v1796_v26 = vmul.f32 0.03125, %v1792_v4 }
 0xd35   : > { %v1798_v7 = vadd.f32 1e-12, %v1796_v26 }
 0xd36   : > { %v1795_v8 = vpop.xlane.xlu0 %1794 }
 0xd37   : > { %2553 = vrsqrt.f32 %v1798_v7  ;;  %v1797_v9 = vmul.f32 0.03125, %v1795_v8 }
 0xd39   : > { %v1799_v10 = vadd.f32 1e-12, %v1797_v9 }
 0xd3b   : > { %2555 = vrsqrt.f32 %v1799_v10 }
 0xd41   : > { %v2554_v11 = vpop.eup %2553 }
 0xd42   : > { %v1802_v13 = vmul.f32 %v2554_v11, %v1786_v61 }
 0xd44   : > { %v1810_v12 = vmul.f32 %v2287_v54, %v1802_v13 }
 0xd45   : > { %v2556_v58 = vpop.eup %2555 }
 0xd46   : > { %v1803_v14 = vmul.f32 %v2556_v58, %v1787_v63  ;;  %v1818_v18 = vadd.f32 %v2288_v15, %v1810_v12 }
 0xd48   : > { %v1811_v17 = vmul.f32 %v2287_v54, %v1803_v14  ;;  %v2299_v14 = vld [vmem:[%s666_s24] ss:$0 sm:$0xff] }
 0xd4a   : > { %v1819_v19 = vadd.f32 %v2288_v15, %v1811_v17 }
 0xd4c   : > { %v1820_v20 = vpack.c.bf16 %v1819_v19, %v1818_v18 }
 0xd4e   : > { %2472 = vmatmul.mubr.msk.bf16.vlgmr.msra.gmra.mrb[36].mxu0 %vm716_vm2, %v1820_v20 }
 0xe21   : > { %v1881_v27 = vpop.f32.mrb[36].mxu0 }
 0xe22   : > { %v1882_v28 = vadd.f32 %v2289_v16, %v1881_v27  ;;  %v2473_v29 = vpop.f32.mrb[37].mxu0 }
 0xe23   : > { %v1884_v30 = vpop.f32.mrb[38].mxu0 }
 0xe24   : > { %v1890_v31 = vmul.f32 0.044715, %v1882_v28  ;;  %v1885_v32 = vadd.f32 %v2289_v16, %v1884_v30  ;;  %v2474_v33 = vpop.f32.mrb[39].mxu0  ;;  %v1888_v45 = vmul.f32 0.5, %v1882_v28 }
 0xe26   : > { %v1892_v34 = vmul.f32 %v1890_v31, %v1882_v28  ;;  %v1891_v35 = vmul.f32 0.044715, %v1885_v32  ;;  %v1889_v46 = vmul.f32 0.5, %v1885_v32 }
 0xe28   : > { %v1894_v36 = vmul.f32 %v1892_v34, %v1882_v28  ;;  %v1893_v37 = vmul.f32 %v1891_v35, %v1885_v32 }
 0xe2a   : > { %v1896_v38 = vadd.f32 %v1894_v36, %v1882_v28  ;;  %v1895_v39 = vmul.f32 %v1893_v37, %v1885_v32 }
 0xe2c   : > { %v1898_v3 = vmul.f32 0.7978846, %v1896_v38  ;;  %v1897_v40 = vadd.f32 %v1895_v39, %v1885_v32 }
 0xe2e   : > { %2557 = vtanh.f32 %v1898_v3  ;;  %v1899_v41 = vmul.f32 0.7978846, %v1897_v40 }
 0xe30   : > { %2559 = vtanh.f32 %v1899_v41 }
 0xe38   : > { %v2558_v42 = vpop.eup %2557 }
 0xe39   : > { %v1902_v43 = vadd.f32 1.0, %v2558_v42 }
 0xe3a   : > { %v2560_v44 = vpop.eup %2559 }
 0xe3b   : > { %v1903_v47 = vadd.f32 1.0, %v2560_v44  ;;  %v1904_v48 = vmul.f32 %v1902_v43, %v1888_v45 }
 0xe3d   : > { %v1905_v49 = vmul.f32 %v1903_v47, %v1889_v46 }
 0xe3f   : > { %v1906_v50 = vpack.c.bf16 %v1905_v49, %v1904_v48 }
 0xe41   : > { %2484 = vmatmul.mubr.msk.bf16.vlgmr.msra.gmra.mrb[36].mxu1 %vm1946_vm8, %v1906_v50 }
 0xf14   : > { %v1984_v52 = vpop.f32.mrb[36].mxu1 }
 0xf15   : > { %v1985_v53 = vadd.f32 %v2293_v51, %v1984_v52  ;;  %v2485_v55 = vpop.f32.mrb[37].mxu1 }
 0xf16   : > { %v1987_v56 = vpop.f32.mrb[38].mxu1 }
 0xf17   : > { %v1988_v57 = vadd.f32 %v2293_v51, %v1987_v56  ;;  %v2486_v59 = vpop.f32.mrb[39].mxu1  ;;  %v1991_v60 = vadd.f32 %v1985_v53, %v1818_v18  ;;  %v2300_v18 = vld [vmem:[%s669_s8] ss:$0 sm:$0xff] }
 0xf19   : > { %v1995_v61 = vsel %vm716_vm2, %v1991_v60, 0.0  ;;  %v1992_v62 = vadd.f32 %v1988_v57, %v1819_v19 }
 0xf1a   : > { %1996 = vadd.xlane.f32.xlu1 %v1995_v61 }
 0xf1b   : > { %v1998_v63 = vsel %vm716_vm2, %v1992_v62, 0.0 }
 0xf1c   : > { %1999 = vadd.xlane.f32.xlu0 %v1998_v63 }
 0xfa7   : > { %v1997_v0 = vpop.xlane.xlu1 %1996 }
 0xfa8   : > { %v2001_v1 = vmul.f32 0.03125, %v1997_v0 }
 0xfa9   : > { %v2000_v5 = vpop.xlane.xlu0 %1999 }
 0xfaa   : > { %v2003_v2 = vsub.f32 %v1991_v60, %v2001_v1  ;;  %v2002_v6 = vmul.f32 0.03125, %v2000_v5 }
 0xfac   : > { %v2004_v21 = vsub.f32 %v1992_v62, %v2002_v6  ;;  %v2005_v4 = vmul.f32 %v2003_v2, %v2003_v2 }
 0xfae   : > { %v2007_v26 = vsel %vm716_vm2, %v2005_v4, 0.0  ;;  %v2006_v7 = vmul.f32 %v2004_v21, %v2004_v21 }
 0xfaf   : > { %2008 = vadd.xlane.f32.xlu1 %v2007_v26 }
 0xfb0   : > { %v2010_v8 = vsel %vm716_vm2, %v2006_v7, 0.0 }
 0xfb1   : > { %2011 = vadd.xlane.f32.xlu0 %v2010_v8 }
0x103c   : > { %v2009_v9 = vpop.xlane.xlu1 %2008 }
0x103d   : > { %v2013_v10 = vmul.f32 0.03125, %v2009_v9 }
0x103e   : > { %v2012_v11 = vpop.xlane.xlu0 %2011 }
0x103f   : > { %v2015_v13 = vadd.f32 1e-12, %v2013_v10  ;;  %v2014_v54 = vmul.f32 0.03125, %v2012_v11 }
0x1041   : > { %2561 = vrsqrt.f32 %v2015_v13  ;;  %v2016_v58 = vadd.f32 1e-12, %v2014_v54 }
0x1043   : > { %2563 = vrsqrt.f32 %v2016_v58 }
0x104b   : > { %v2562_v12 = vpop.eup %2561 }
0x104c   : > { %v2019_v15 = vmul.f32 %v2562_v12, %v2003_v2 }
0x104d   : > { %v2564_v17 = vpop.eup %2563 }
0x104e   : > { %v2027_v19 = vmul.f32 %v2299_v14, %v2019_v15  ;;  %v2020_v20 = vmul.f32 %v2564_v17, %v2004_v21 }
0x1050   : > { %v2035_v22 = vadd.f32 %v2300_v18, %v2027_v19  ;;  %v2028_v23 = vmul.f32 %v2299_v14, %v2020_v20 }
0x1052   : > { %2037 = vst.msk [vmem:[#allocation2] sm:$0xff] %vm716_vm2, %v2035_v22  ;;  %2039 = vst.msk [vmem:[%s2734_s9] sm:$0xff] %vm716_vm2, %v2035_v22  ;;  %v2036_v24 = vadd.f32 %v2300_v18, %v2028_v23 }
0x1054   : > { %2038 = vst.msk [vmem:[#allocation2 + $0x8] sm:$0xff] %vm716_vm2, %v2036_v24  ;;  %2040 = vst.msk [vmem:[%s2734_s9 + $0x8] sm:$0xff] %vm716_vm2, %v2036_v24 }
0x1055 PF: > { %s3059_s24 = sld [smem:[#allocation4_spill]] }
0x105b   : > { %s26_s18 = sadd.s32 1, %s3059_s24  }
0x105c   : > { %p23_p5 = scmp.ge.s32.totalorder %s26_s18, 4  }
0x105e   :  { %25 = sbr.rel (!%p23_p5) target bundleno = 11 (0xb), region = 158 }

</bundles_post_ra>
